<compile_context>
chip_gen: v5e
topology: v5e:2x2
jax: 0.10.0
libtpu: 0.0.40
codegen_flags: <defaults>
</compile_context>

<pallas_src>
import functools

import jax
import jax.numpy as jnp
import numpy as np
from jax import lax
from jax.experimental import pallas as pl
from jax.experimental.pallas import tpu as pltpu

PARAM_ORDER = (
    "sa_wq", "sa_bq", "sa_wk", "sa_bk", "sa_wv", "sa_bv", "sa_wo", "sa_bo",
    "ln1_g", "ln1_b",
    "ca_wq", "ca_bq", "ca_wk", "ca_bk", "ca_wv", "ca_bv", "ca_wo", "ca_bo",
    "ln2_g", "ln2_b",
    "ff_w1", "ff_b1", "ff_w2", "ff_b2",
    "ln3_g", "ln3_b",
)

_MATMUL_WEIGHTS = frozenset({
    "sa_wq", "sa_wk", "sa_wv", "sa_wo",
    "ca_wq", "ca_wk", "ca_wv", "ca_wo",
    "ff_w1", "ff_w2",
})


def _layer_norm(x, gamma, beta, eps=1e-5):
    mean = jnp.mean(x, axis=-1, keepdims=True)
    var = jnp.mean((x - mean) ** 2, axis=-1, keepdims=True)
    return (x - mean) * lax.rsqrt(var + eps) * gamma + beta


def _mha(xq, xkv, neg_bias, wq, bq, wk, bk, wv, bv, wo, bo,
         n_heads, compute_dtype, approx_recip, need_attn):
    """Multi-head attention on 2-D tiles; heads batched into single dot_generals.

    Returns (out [Lq,H] f32, attn [n_heads,Lq,Lk] f32 or None)."""
    Lq, H = xq.shape
    Lk = xkv.shape[0]
    hd = H // n_heads
    inv_scale = 1.0 / float(np.sqrt(hd))

    xq_c = xq.astype(compute_dtype)
    xkv_c = xkv.astype(compute_dtype)
    # Projections: MXU matmuls in compute_dtype, f32 accumulation, f32 bias adds.
    q = jnp.dot(xq_c, wq, preferred_element_type=jnp.float32) + bq
    k = jnp.dot(xkv_c, wk, preferred_element_type=jnp.float32) + bk
    v = jnp.dot(xkv_c, wv, preferred_element_type=jnp.float32) + bv

    # Split heads once; all heads go through one batched matmul each.
    q3 = q.reshape(Lq, n_heads, hd).astype(compute_dtype)
    k3 = k.reshape(Lk, n_heads, hd).astype(compute_dtype)
    v3 = v.reshape(Lk, n_heads, hd).astype(compute_dtype)

    energy = jnp.einsum("qhd,khd->hqk", q3, k3,
                        preferred_element_type=jnp.float32)
    # Additive mask bias precomputed once outside the head math.
    energy = energy * inv_scale + neg_bias[None, :, :]

    m = jnp.max(energy, axis=-1, keepdims=True)
    e = jnp.exp(energy - m)
    denom = jnp.sum(e, axis=-1, keepdims=True)
    attn = e * pl.reciprocal(denom, approx=approx_recip)

    ctx = jnp.einsum("hqk,khd->qhd", attn.astype(compute_dtype), v3,
                     preferred_element_type=jnp.float32)
    concat = ctx.reshape(Lq, H).astype(compute_dtype)
    out = jnp.dot(concat, wo, preferred_element_type=jnp.float32) + bo
    return out, (attn if need_attn else None)


def _decoder_layer_kernel(n_heads, pf_dim, pf_chunk, compute_dtype,
                          approx_recip, return_attention,
                          trgq_ref, trgkv_ref, enc_ref, tmask_ref, smask_ref,
                          *rest):
    if return_attention:
        param_refs, out_ref, attn_ref = rest[:-2], rest[-2], rest[-1]
    else:
        param_refs, out_ref, attn_ref = rest[:-1], rest[-1], None
    (sa_wq, sa_bq, sa_wk, sa_bk, sa_wv, sa_bv, sa_wo, sa_bo,
     ln1_g, ln1_b,
     ca_wq, ca_bq, ca_wk, ca_bk, ca_wv, ca_bv, ca_wo, ca_bo,
     ln2_g, ln2_b,
     ff_w1, ff_b1, ff_w2, ff_b2,
     ln3_g, ln3_b) = param_refs

    trg_q = trgq_ref[0]        # (tq, H)  query rows handled by this grid step
    trg_kv = trgkv_ref[0]      # (Lt, H)  full target sequence (keys / values)
    enc = enc_ref[0]           # (Ls, H)

    # Mask -> additive bias, computed once per block (not per head).
    neg_t = (1.0 - tmask_ref[0]) * -1e10   # (tq, Lt)
    neg_s = (1.0 - smask_ref[0]) * -1e10   # (1, Ls), broadcasts over query rows

    # ---- self attention + residual + LN (dropout = identity) ----
    sa_out, _ = _mha(trg_q, trg_kv, neg_t,
                     sa_wq[...], sa_bq[...], sa_wk[...], sa_bk[...],
                     sa_wv[...], sa_bv[...], sa_wo[...], sa_bo[...],
                     n_heads, compute_dtype, approx_recip, need_attn=False)
    x = _layer_norm(trg_q + sa_out, ln1_g[...], ln1_b[...])

    # ---- encoder (cross) attention + residual + LN ----
    ca_out, ca_attn = _mha(x, enc, neg_s,
                           ca_wq[...], ca_bq[...], ca_wk[...], ca_bk[...],
                           ca_wv[...], ca_bv[...], ca_wo[...], ca_bo[...],
                           n_heads, compute_dtype, approx_recip,
                           need_attn=return_attention)
    x = _layer_norm(x + ca_out, ln2_g[...], ln2_b[...])
    if return_attention:
        attn_ref[0] = ca_attn          # single slab store, all heads at once

    # ---- position-wise feed-forward, chunked over pf_dim + residual + LN ----
    x_c = x.astype(compute_dtype)
    acc = jnp.zeros(x.shape, jnp.float32)
    for c0 in range(0, pf_dim, pf_chunk):
        c1 = min(c0 + pf_chunk, pf_dim)
        h1 = jnp.maximum(
            jnp.dot(x_c, ff_w1[:, c0:c1], preferred_element_type=jnp.float32)
            + ff_b1[:, c0:c1], 0.0)
        acc = acc + jnp.dot(h1.astype(compute_dtype), ff_w2[c0:c1, :],
                            preferred_element_type=jnp.float32)
    ff = acc + ff_b2[...]
    out_ref[0] = _layer_norm(x + ff, ln3_g[...], ln3_b[...]).astype(out_ref.dtype)


def decoder_layer(trg, enc_src, trg_mask, src_mask, params, n_heads, *,
                  matmul_dtype=jnp.bfloat16, return_attention=True,
                  q_tile=None, pf_chunk=512):
    B, Lt, H = trg.shape
    Ls = enc_src.shape[1]
    pf_dim = params["ff_w1"].shape[1]
    assert H % n_heads == 0

    # Query tiling over Lt: bounds activation / mask tiles, second parallel axis.
    if q_tile is None:
        q_tile = Lt
        for t in (256, 128):
            if Lt % t == 0:
                q_tile = t
                break
    assert Lt % q_tile == 0
    n_qt = Lt // q_tile
    pf_chunk = max(1, min(pf_chunk, pf_dim))

    matmul_dtype = jnp.dtype(matmul_dtype)
    approx_recip = bool(matmul_dtype == jnp.dtype(jnp.bfloat16))

    # Cast the big matmul weights to the MXU input dtype (halves their DMA and
    # VMEM footprint when bf16); biases and LayerNorm params stay f32.
    param_list = []
    for name in PARAM_ORDER:
        p = params[name]
        if name in _MATMUL_WEIGHTS:
            p = p.astype(matmul_dtype)
        param_list.append(p)

    in_specs = [
        pl.BlockSpec((1, q_tile, H), lambda b, qi: (b, qi, 0)),    # trg query tile
        pl.BlockSpec((1, Lt, H), lambda b, qi: (b, 0, 0)),         # trg full (K/V)
        pl.BlockSpec((1, Ls, H), lambda b, qi: (b, 0, 0)),         # enc_src
        pl.BlockSpec((1, q_tile, Lt), lambda b, qi: (b, qi, 0)),   # trg_mask tile
        pl.BlockSpec((1, 1, Ls), lambda b, qi: (b, 0, 0)),         # src_mask
    ]
    # Parameters are constant across the grid -> single-buffer them.
    for p in param_list:
        in_specs.append(pl.BlockSpec(
            p.shape, lambda b, qi, nd=p.ndim: (0,) * nd,
            pipeline_mode=pl.Buffered(1)))

    out_specs = [pl.BlockSpec((1, q_tile, H), lambda b, qi: (b, qi, 0))]
    out_shape = [jax.ShapeDtypeStruct((B, Lt, H), jnp.float32)]
    if return_attention:
        out_specs.append(
            pl.BlockSpec((1, n_heads, q_tile, Ls), lambda b, qi: (b, 0, qi, 0)))
        out_shape.append(
            jax.ShapeDtypeStruct((B, n_heads, Lt, Ls), jnp.float32))

    # ----- VMEM budget + advisory cost estimate -----
    def _nbytes(shape, dtype):
        return int(np.prod(shape)) * jnp.dtype(dtype).itemsize

    param_bytes = sum(_nbytes(p.shape, p.dtype) for p in param_list)
    act_bytes = 2 * (_nbytes((q_tile, H), jnp.float32)
                     + _nbytes((Lt, H), jnp.float32)
                     + _nbytes((Ls, H), jnp.float32)
                     + _nbytes((q_tile, Lt), jnp.float32)
                     + _nbytes((1, Ls), jnp.float32)
                     + _nbytes((q_tile, H), jnp.float32))
    if return_attention:
        act_bytes += 2 * _nbytes((n_heads, q_tile, Ls), jnp.float32)
    interm_bytes = (4 * _nbytes((n_heads, q_tile, max(Lt, Ls)), jnp.float32)
                    + 2 * _nbytes((q_tile, pf_chunk), jnp.float32)
                    + 6 * _nbytes((q_tile, H), jnp.float32))
    vmem_limit = int(min(max(param_bytes + act_bytes + interm_bytes + (4 << 20),
                             32 << 20),
                         64 << 20))

    flops = int(B * (8 * Lt * H * H + 4 * Lt * Lt * H                # self attn
                     + 4 * Lt * H * H + 4 * Ls * H * H + 4 * Lt * Ls * H  # cross
                     + 4 * Lt * H * pf_dim))                         # FFN
    transcend = int(B * n_heads * Lt * (Lt + Ls))                    # softmax exps
    bytes_acc = int(2 * _nbytes(trg.shape, trg.dtype)
                    + _nbytes(enc_src.shape, enc_src.dtype)
                    + _nbytes(trg_mask.shape, trg_mask.dtype)
                    + _nbytes(src_mask.shape, src_mask.dtype)
                    + param_bytes + B * Lt * H * 4
                    + (B * n_heads * Lt * Ls * 4 if return_attention else 0))

    kernel = functools.partial(
        _decoder_layer_kernel, n_heads, pf_dim, pf_chunk, matmul_dtype,
        approx_recip, return_attention)

    outs = pl.pallas_call(
        kernel,
        grid=(B, n_qt),
        in_specs=in_specs,
        out_specs=out_specs,
        out_shape=out_shape,
        compiler_params=pltpu.CompilerParams(
            dimension_semantics=("parallel", "parallel"),
            vmem_limit_bytes=vmem_limit),
        cost_estimate=pl.CostEstimate(
            flops=flops, transcendentals=transcend, bytes_accessed=bytes_acc),
    )(trg, trg, enc_src, trg_mask, src_mask, *param_list)

    if return_attention:
        return outs[0], outs[1]
    return outs[0], None


# ----------------------------- pure-JAX reference -----------------------------
def _ref_mha(xq, xkv, mask, params, pfx, n_heads):
    B, Lq, H = xq.shape
    Lk = xkv.shape[1]
    hd = H // n_heads
    q = xq @ params[pfx + "_wq"] + params[pfx + "_bq"]
    k = xkv @ params[pfx + "_wk"] + params[pfx + "_bk"]
    v = xkv @ params[pfx + "_wv"] + params[pfx + "_bv"]
    q = q.reshape(B, Lq, n_heads, hd).transpose(0, 2, 1, 3)
    k = k.reshape(B, Lk, n_heads, hd).transpose(0, 2, 1, 3)
    v = v.reshape(B, Lk, n_heads, hd).transpose(0, 2, 1, 3)
    energy = jnp.einsum("bhqd,bhkd->bhqk", q, k) / (hd ** 0.5)
    energy = jnp.where(mask[:, None] == 0, -1e10, energy)
    attn = jax.nn.softmax(energy, axis=-1)
    o = jnp.einsum("bhqk,bhkd->bhqd", attn, v).transpose(0, 2, 1, 3).reshape(B, Lq, H)
    return o @ params[pfx + "_wo"] + params[pfx + "_bo"], attn


def _ref_ln(x, g, b, eps=1e-5):
    m = jnp.mean(x, -1, keepdims=True)
    var = jnp.mean((x - m) ** 2, -1, keepdims=True)
    return (x - m) / jnp.sqrt(var + eps) * g + b


def reference(trg, enc_src, trg_mask, src_mask, params, n_heads):
    sa, _ = _ref_mha(trg, trg, trg_mask, params, "sa", n_heads)
    x = _ref_ln(trg + sa, params["ln1_g"], params["ln1_b"])
    ca, attn = _ref_mha(x, enc_src, src_mask, params, "ca", n_heads)
    x = _ref_ln(x + ca, params["ln2_g"], params["ln2_b"])
    ff = jnp.maximum(x @ params["ff_w1"] + params["ff_b1"], 0.0) @ params["ff_w2"] + params["ff_b2"]
    x = _ref_ln(x + ff, params["ln3_g"], params["ln3_b"])
    return x, attn


def init_params(key, hid_dim, pf_dim):
    params = {}
    ks = iter(jax.random.split(key, 32))

    def lin(k, din, dout):
        w = jax.random.normal(k, (din, dout), jnp.float32) * (1.0 / np.sqrt(din))
        b = jnp.zeros((1, dout), jnp.float32) + 0.01
        return w, b

    for pfx in ("sa", "ca"):
        for name in ("q", "k", "v", "o"):
            w, b = lin(next(ks), hid_dim, hid_dim)
            params[f"{pfx}_w{name}"] = w
            params[f"{pfx}_b{name}"] = b
    for i in (1, 2, 3):
        params[f"ln{i}_g"] = jnp.ones((1, hid_dim), jnp.float32)
        params[f"ln{i}_b"] = jnp.zeros((1, hid_dim), jnp.float32)
    params["ff_w1"], params["ff_b1"] = lin(next(ks), hid_dim, pf_dim)
    params["ff_w2"], params["ff_b2"] = lin(next(ks), pf_dim, hid_dim)
    return params


if __name__ == "__main__":
    B, Lt, Ls, H, n_heads, pf_dim = 2, 8, 8, 32, 4, 64

    key = jax.random.PRNGKey(0)
    k_trg, k_enc, k_par, k_msk = jax.random.split(key, 4)

    trg = jax.random.normal(k_trg, (B, Lt, H), jnp.float32)
    enc_src = jax.random.normal(k_enc, (B, Ls, H), jnp.float32)

    # causal target mask, and a source mask with some padded positions
    trg_mask = jnp.broadcast_to(
        jnp.tril(jnp.ones((Lt, Lt), jnp.float32)), (B, Lt, Lt))
    src_valid = (jax.random.uniform(k_msk, (B, 1, Ls)) > 0.2).astype(jnp.float32)
    src_mask = src_valid.at[:, :, 0].set(1.0)  # at least one valid key position

    params = init_params(k_par, H, pf_dim)

    ref_out, ref_attn = reference(trg, enc_src, trg_mask, src_mask, params, n_heads)

    # Exact-precision path (f32 MXU inputs): tight tolerance.
    out32, attn32 = decoder_layer(trg, enc_src, trg_mask, src_mask, params,
                                  n_heads, matmul_dtype=jnp.float32)
    jax.block_until_ready(out32)
    jax.block_until_ready(attn32)
    np.testing.assert_allclose(np.asarray(out32), np.asarray(ref_out),
                               rtol=2e-3, atol=2e-3)
    np.testing.assert_allclose(np.asarray(attn32), np.asarray(ref_attn),
                               rtol=2e-3, atol=2e-3)

    # Default performance path: bf16 MXU inputs, f32 accumulation / softmax / LN.
    out_bf, attn_bf = decoder_layer(trg, enc_src, trg_mask, src_mask, params,
                                    n_heads)
    jax.block_until_ready(out_bf)
    jax.block_until_ready(attn_bf)
    np.testing.assert_allclose(np.asarray(out_bf), np.asarray(ref_out),
                               rtol=5e-2, atol=5e-2)
    np.testing.assert_allclose(np.asarray(attn_bf), np.asarray(ref_attn),
                               rtol=5e-2, atol=5e-2)

    print("KERNEL_OK")
</pallas_src>

<mosaic_0001>
module attributes {stable_mosaic.version = 11 : i64} {
  func.func @_decoder_layer_kernel(%arg0: i32, %arg1: i32, %arg2: memref<1x8x32xf32, #tpu.memory_space<vmem>>, %arg3: memref<1x8x32xf32, #tpu.memory_space<vmem>>, %arg4: memref<1x8x32xf32, #tpu.memory_space<vmem>>, %arg5: memref<1x8x8xf32, #tpu.memory_space<vmem>>, %arg6: memref<1x1x8xf32, #tpu.memory_space<vmem>>, %arg7: memref<32x32xf32, #tpu.memory_space<vmem>>, %arg8: memref<1x32xf32, #tpu.memory_space<vmem>>, %arg9: memref<32x32xf32, #tpu.memory_space<vmem>>, %arg10: memref<1x32xf32, #tpu.memory_space<vmem>>, %arg11: memref<32x32xf32, #tpu.memory_space<vmem>>, %arg12: memref<1x32xf32, #tpu.memory_space<vmem>>, %arg13: memref<32x32xf32, #tpu.memory_space<vmem>>, %arg14: memref<1x32xf32, #tpu.memory_space<vmem>>, %arg15: memref<1x32xf32, #tpu.memory_space<vmem>>, %arg16: memref<1x32xf32, #tpu.memory_space<vmem>>, %arg17: memref<32x32xf32, #tpu.memory_space<vmem>>, %arg18: memref<1x32xf32, #tpu.memory_space<vmem>>, %arg19: memref<32x32xf32, #tpu.memory_space<vmem>>, %arg20: memref<1x32xf32, #tpu.memory_space<vmem>>, %arg21: memref<32x32xf32, #tpu.memory_space<vmem>>, %arg22: memref<1x32xf32, #tpu.memory_space<vmem>>, %arg23: memref<32x32xf32, #tpu.memory_space<vmem>>, %arg24: memref<1x32xf32, #tpu.memory_space<vmem>>, %arg25: memref<1x32xf32, #tpu.memory_space<vmem>>, %arg26: memref<1x32xf32, #tpu.memory_space<vmem>>, %arg27: memref<32x64xf32, #tpu.memory_space<vmem>>, %arg28: memref<1x64xf32, #tpu.memory_space<vmem>>, %arg29: memref<64x32xf32, #tpu.memory_space<vmem>>, %arg30: memref<1x32xf32, #tpu.memory_space<vmem>>, %arg31: memref<1x32xf32, #tpu.memory_space<vmem>>, %arg32: memref<1x32xf32, #tpu.memory_space<vmem>>, %arg33: memref<1x8x32xf32, #tpu.memory_space<vmem>>, %arg34: memref<1x4x8x8xf32, #tpu.memory_space<vmem>>) attributes {dimension_semantics = [#tpu.dimension_semantics<parallel>, #tpu.dimension_semantics<parallel>], iteration_bounds = array<i64: 2, 1>, scalar_prefetch = 0 : i64, scratch_operands = 0 : i64, tpu.core_type = #tpu.core_type<tc>, window_params = [{transform_indices = @transform_0, window_bounds = array<i64: 1, 8, 32>}, {transform_indices = @transform_1, window_bounds = array<i64: 1, 8, 32>}, {transform_indices = @transform_2, window_bounds = array<i64: 1, 8, 32>}, {transform_indices = @transform_3, window_bounds = array<i64: 1, 8, 8>}, {transform_indices = @transform_4, window_bounds = array<i64: 1, 1, 8>}, {pipeline_mode = #tpu.pipeline_mode<synchronous>, transform_indices = @transform_5, window_bounds = array<i64: 32, 32>}, {pipeline_mode = #tpu.pipeline_mode<synchronous>, transform_indices = @transform_6, window_bounds = array<i64: 1, 32>}, {pipeline_mode = #tpu.pipeline_mode<synchronous>, transform_indices = @transform_7, window_bounds = array<i64: 32, 32>}, {pipeline_mode = #tpu.pipeline_mode<synchronous>, transform_indices = @transform_8, window_bounds = array<i64: 1, 32>}, {pipeline_mode = #tpu.pipeline_mode<synchronous>, transform_indices = @transform_9, window_bounds = array<i64: 32, 32>}, {pipeline_mode = #tpu.pipeline_mode<synchronous>, transform_indices = @transform_10, window_bounds = array<i64: 1, 32>}, {pipeline_mode = #tpu.pipeline_mode<synchronous>, transform_indices = @transform_11, window_bounds = array<i64: 32, 32>}, {pipeline_mode = #tpu.pipeline_mode<synchronous>, transform_indices = @transform_12, window_bounds = array<i64: 1, 32>}, {pipeline_mode = #tpu.pipeline_mode<synchronous>, transform_indices = @transform_13, window_bounds = array<i64: 1, 32>}, {pipeline_mode = #tpu.pipeline_mode<synchronous>, transform_indices = @transform_14, window_bounds = array<i64: 1, 32>}, {pipeline_mode = #tpu.pipeline_mode<synchronous>, transform_indices = @transform_15, window_bounds = array<i64: 32, 32>}, {pipeline_mode = #tpu.pipeline_mode<synchronous>, transform_indices = @transform_16, window_bounds = array<i64: 1, 32>}, {pipeline_mode = #tpu.pipeline_mode<synchronous>, transform_indices = @transform_17, window_bounds = array<i64: 32, 32>}, {pipeline_mode = #tpu.pipeline_mode<synchronous>, transform_indices = @transform_18, window_bounds = array<i64: 1, 32>}, {pipeline_mode = #tpu.pipeline_mode<synchronous>, transform_indices = @transform_19, window_bounds = array<i64: 32, 32>}, {pipeline_mode = #tpu.pipeline_mode<synchronous>, transform_indices = @transform_20, window_bounds = array<i64: 1, 32>}, {pipeline_mode = #tpu.pipeline_mode<synchronous>, transform_indices = @transform_21, window_bounds = array<i64: 32, 32>}, {pipeline_mode = #tpu.pipeline_mode<synchronous>, transform_indices = @transform_22, window_bounds = array<i64: 1, 32>}, {pipeline_mode = #tpu.pipeline_mode<synchronous>, transform_indices = @transform_23, window_bounds = array<i64: 1, 32>}, {pipeline_mode = #tpu.pipeline_mode<synchronous>, transform_indices = @transform_24, window_bounds = array<i64: 1, 32>}, {pipeline_mode = #tpu.pipeline_mode<synchronous>, transform_indices = @transform_25, window_bounds = array<i64: 32, 64>}, {pipeline_mode = #tpu.pipeline_mode<synchronous>, transform_indices = @transform_26, window_bounds = array<i64: 1, 64>}, {pipeline_mode = #tpu.pipeline_mode<synchronous>, transform_indices = @transform_27, window_bounds = array<i64: 64, 32>}, {pipeline_mode = #tpu.pipeline_mode<synchronous>, transform_indices = @transform_28, window_bounds = array<i64: 1, 32>}, {pipeline_mode = #tpu.pipeline_mode<synchronous>, transform_indices = @transform_29, window_bounds = array<i64: 1, 32>}, {pipeline_mode = #tpu.pipeline_mode<synchronous>, transform_indices = @transform_30, window_bounds = array<i64: 1, 32>}, {transform_indices = @transform_31, window_bounds = array<i64: 1, 8, 32>}, {transform_indices = @transform_32, window_bounds = array<i64: 1, 4, 8, 8>}]} {
    %c0 = arith.constant 0 : index
    %c0_0 = arith.constant 0 : index
    %c0_1 = arith.constant 0 : index
    %0 = vector.load %arg2[%c0, %c0_0, %c0_1] : memref<1x8x32xf32, #tpu.memory_space<vmem>>, vector<1x8x32xf32>
    %1 = vector.shape_cast %0 : vector<1x8x32xf32> to vector<8x32xf32>
    %c0_2 = arith.constant 0 : index
    %c0_3 = arith.constant 0 : index
    %c0_4 = arith.constant 0 : index
    %2 = vector.load %arg3[%c0_2, %c0_3, %c0_4] : memref<1x8x32xf32, #tpu.memory_space<vmem>>, vector<1x8x32xf32>
    %3 = vector.shape_cast %2 : vector<1x8x32xf32> to vector<8x32xf32>
    %c0_5 = arith.constant 0 : index
    %c0_6 = arith.constant 0 : index
    %c0_7 = arith.constant 0 : index
    %4 = vector.load %arg4[%c0_5, %c0_6, %c0_7] : memref<1x8x32xf32, #tpu.memory_space<vmem>>, vector<1x8x32xf32>
    %5 = vector.shape_cast %4 : vector<1x8x32xf32> to vector<8x32xf32>
    %c0_8 = arith.constant 0 : index
    %c0_9 = arith.constant 0 : index
    %c0_10 = arith.constant 0 : index
    %6 = vector.load %arg5[%c0_8, %c0_9, %c0_10] : memref<1x8x8xf32, #tpu.memory_space<vmem>>, vector<1x8x8xf32>
    %7 = vector.shape_cast %6 : vector<1x8x8xf32> to vector<8x8xf32>
    %cst = arith.constant 1.000000e+00 : f32
    %8 = vector.broadcast %cst : f32 to vector<8x8xf32>
    %9 = arith.subf %8, %7 : vector<8x8xf32>
    %cst_11 = arith.constant -1.000000e+10 : f32
    %10 = vector.broadcast %cst_11 : f32 to vector<8x8xf32>
    %11 = arith.mulf %9, %10 : vector<8x8xf32>
    %c0_12 = arith.constant 0 : index
    %c0_13 = arith.constant 0 : index
    %c0_14 = arith.constant 0 : index
    %12 = vector.load %arg6[%c0_12, %c0_13, %c0_14] : memref<1x1x8xf32, #tpu.memory_space<vmem>>, vector<1x1x8xf32>
    %13 = vector.shape_cast %12 : vector<1x1x8xf32> to vector<1x8xf32>
    %cst_15 = arith.constant 1.000000e+00 : f32
    %14 = vector.broadcast %cst_15 : f32 to vector<1x8xf32>
    %15 = arith.subf %14, %13 : vector<1x8xf32>
    %cst_16 = arith.constant -1.000000e+10 : f32
    %16 = vector.broadcast %cst_16 : f32 to vector<1x8xf32>
    %17 = arith.mulf %15, %16 : vector<1x8xf32>
    %c0_17 = arith.constant 0 : index
    %c0_18 = arith.constant 0 : index
    %18 = vector.load %arg7[%c0_17, %c0_18] : memref<32x32xf32, #tpu.memory_space<vmem>>, vector<32x32xf32>
    %c0_19 = arith.constant 0 : index
    %c0_20 = arith.constant 0 : index
    %19 = vector.load %arg8[%c0_19, %c0_20] : memref<1x32xf32, #tpu.memory_space<vmem>>, vector<1x32xf32>
    %c0_21 = arith.constant 0 : index
    %c0_22 = arith.constant 0 : index
    %20 = vector.load %arg9[%c0_21, %c0_22] : memref<32x32xf32, #tpu.memory_space<vmem>>, vector<32x32xf32>
    %c0_23 = arith.constant 0 : index
    %c0_24 = arith.constant 0 : index
    %21 = vector.load %arg10[%c0_23, %c0_24] : memref<1x32xf32, #tpu.memory_space<vmem>>, vector<1x32xf32>
    %c0_25 = arith.constant 0 : index
    %c0_26 = arith.constant 0 : index
    %22 = vector.load %arg11[%c0_25, %c0_26] : memref<32x32xf32, #tpu.memory_space<vmem>>, vector<32x32xf32>
    %c0_27 = arith.constant 0 : index
    %c0_28 = arith.constant 0 : index
    %23 = vector.load %arg12[%c0_27, %c0_28] : memref<1x32xf32, #tpu.memory_space<vmem>>, vector<1x32xf32>
    %c0_29 = arith.constant 0 : index
    %c0_30 = arith.constant 0 : index
    %24 = vector.load %arg13[%c0_29, %c0_30] : memref<32x32xf32, #tpu.memory_space<vmem>>, vector<32x32xf32>
    %c0_31 = arith.constant 0 : index
    %c0_32 = arith.constant 0 : index
    %25 = vector.load %arg14[%c0_31, %c0_32] : memref<1x32xf32, #tpu.memory_space<vmem>>, vector<1x32xf32>
    %cst_33 = arith.constant dense<0.000000e+00> : vector<8x32xf32>
    %26 = tpu.matmul %1, %18, %cst_33 {dimension_numbers = #tpu.dot_dimension_numbers<[1], [0], [0], [1], [0, 0, 1, 1], [], []>} : vector<8x32xf32>, vector<32x32xf32>, vector<8x32xf32> -> vector<8x32xf32>
    %27 = vector.broadcast %19 : vector<1x32xf32> to vector<8x32xf32>
    %28 = arith.addf %26, %27 : vector<8x32xf32>
    %cst_34 = arith.constant dense<0.000000e+00> : vector<8x32xf32>
    %29 = tpu.matmul %3, %20, %cst_34 {dimension_numbers = #tpu.dot_dimension_numbers<[1], [0], [0], [1], [0, 0, 1, 1], [], []>} : vector<8x32xf32>, vector<32x32xf32>, vector<8x32xf32> -> vector<8x32xf32>
    %30 = vector.broadcast %21 : vector<1x32xf32> to vector<8x32xf32>
    %31 = arith.addf %29, %30 : vector<8x32xf32>
    %cst_35 = arith.constant dense<0.000000e+00> : vector<8x32xf32>
    %32 = tpu.matmul %3, %22, %cst_35 {dimension_numbers = #tpu.dot_dimension_numbers<[1], [0], [0], [1], [0, 0, 1, 1], [], []>} : vector<8x32xf32>, vector<32x32xf32>, vector<8x32xf32> -> vector<8x32xf32>
    %33 = vector.broadcast %23 : vector<1x32xf32> to vector<8x32xf32>
    %34 = arith.addf %32, %33 : vector<8x32xf32>
    %35 = vector.shape_cast %28 : vector<8x32xf32> to vector<8x4x8xf32>
    %36 = vector.shape_cast %31 : vector<8x32xf32> to vector<8x4x8xf32>
    %37 = vector.shape_cast %34 : vector<8x32xf32> to vector<8x4x8xf32>
    "tpu.trace_start"() <{level = 10 : i32, message = "qhd,khd->hqk"}> : () -> ()
    %cst_36 = arith.constant dense<0.000000e+00> : vector<4x8x8xf32>
    %38 = tpu.matmul %35, %36, %cst_36 {dimension_numbers = #tpu.dot_dimension_numbers<[2], [2], [0], [0], [0, 1, 0, 0, 1, 0], [1], [1]>} : vector<8x4x8xf32>, vector<8x4x8xf32>, vector<4x8x8xf32> -> vector<4x8x8xf32>
    "tpu.trace_stop"() : () -> ()
    %cst_37 = arith.constant 0.353553385 : f32
    %39 = vector.broadcast %cst_37 : f32 to vector<4x8x8xf32>
    %40 = arith.mulf %38, %39 : vector<4x8x8xf32>
    %41 = vector.shape_cast %11 : vector<8x8xf32> to vector<1x8x8xf32>
    %42 = vector.broadcast %41 : vector<1x8x8xf32> to vector<4x8x8xf32>
    %43 = arith.addf %40, %42 : vector<4x8x8xf32>
    %cst_38 = arith.constant dense<0xFF800000> : vector<4x8xf32>
    %44 = vector.multi_reduction <maximumf>, %43, %cst_38 [2] : vector<4x8x8xf32> to vector<4x8xf32>
    %45 = vector.shape_cast %44 : vector<4x8xf32> to vector<4x8x1xf32>
    %46 = vector.broadcast %45 : vector<4x8x1xf32> to vector<4x8x8xf32>
    %47 = arith.subf %43, %46 : vector<4x8x8xf32>
    %48 = math.exp %47 : vector<4x8x8xf32>
    %cst_39 = arith.constant dense<0.000000e+00> : vector<4x8xf32>
    %49 = vector.multi_reduction <add>, %48, %cst_39 [2] : vector<4x8x8xf32> to vector<4x8xf32>
    %50 = vector.shape_cast %49 : vector<4x8xf32> to vector<4x8x1xf32>
    %51 = tpu.reciprocal %50 : vector<4x8x1xf32> -> vector<4x8x1xf32>
    %52 = vector.broadcast %51 : vector<4x8x1xf32> to vector<4x8x8xf32>
    %53 = arith.mulf %48, %52 : vector<4x8x8xf32>
    "tpu.trace_start"() <{level = 10 : i32, message = "hqk,khd->qhd"}> : () -> ()
    %cst_40 = arith.constant dense<0.000000e+00> : vector<4x8x8xf32>
    %54 = tpu.matmul %37, %53, %cst_40 {dimension_numbers = #tpu.dot_dimension_numbers<[0], [2], [2], [1], [0, 1, 0, 2, 1, 1], [1], [0]>} : vector<8x4x8xf32>, vector<4x8x8xf32>, vector<4x8x8xf32> -> vector<4x8x8xf32>
    %55 = tpu.transpose %54, [2, 0, 1] : vector<4x8x8xf32> -> vector<8x4x8xf32>
    "tpu.trace_stop"() : () -> ()
    %56 = vector.shape_cast %55 : vector<8x4x8xf32> to vector<8x32xf32>
    %cst_41 = arith.constant dense<0.000000e+00> : vector<8x32xf32>
    %57 = tpu.matmul %56, %24, %cst_41 {dimension_numbers = #tpu.dot_dimension_numbers<[1], [0], [0], [1], [0, 0, 1, 1], [], []>} : vector<8x32xf32>, vector<32x32xf32>, vector<8x32xf32> -> vector<8x32xf32>
    %58 = vector.broadcast %25 : vector<1x32xf32> to vector<8x32xf32>
    %59 = arith.addf %57, %58 : vector<8x32xf32>
    %60 = arith.addf %1, %59 : vector<8x32xf32>
    %c0_42 = arith.constant 0 : index
    %c0_43 = arith.constant 0 : index
    %61 = vector.load %arg15[%c0_42, %c0_43] : memref<1x32xf32, #tpu.memory_space<vmem>>, vector<1x32xf32>
    %c0_44 = arith.constant 0 : index
    %c0_45 = arith.constant 0 : index
    %62 = vector.load %arg16[%c0_44, %c0_45] : memref<1x32xf32, #tpu.memory_space<vmem>>, vector<1x32xf32>
    %cst_46 = arith.constant dense<0.000000e+00> : vector<8xf32>
    %63 = vector.multi_reduction <add>, %60, %cst_46 [1] : vector<8x32xf32> to vector<8xf32>
    %64 = vector.shape_cast %63 : vector<8xf32> to vector<8x1xf32>
    %cst_47 = arith.constant 3.200000e+01 : f32
    %65 = vector.broadcast %cst_47 : f32 to vector<8x1xf32>
    %66 = arith.divf %64, %65 : vector<8x1xf32>
    %67 = vector.broadcast %66 : vector<8x1xf32> to vector<8x32xf32>
    %68 = arith.subf %60, %67 : vector<8x32xf32>
    %69 = arith.mulf %68, %68 : vector<8x32xf32>
    %cst_48 = arith.constant dense<0.000000e+00> : vector<8xf32>
    %70 = vector.multi_reduction <add>, %69, %cst_48 [1] : vector<8x32xf32> to vector<8xf32>
    %71 = vector.shape_cast %70 : vector<8xf32> to vector<8x1xf32>
    %cst_49 = arith.constant 3.200000e+01 : f32
    %72 = vector.broadcast %cst_49 : f32 to vector<8x1xf32>
    %73 = arith.divf %71, %72 : vector<8x1xf32>
    %74 = vector.broadcast %66 : vector<8x1xf32> to vector<8x32xf32>
    %75 = arith.subf %60, %74 : vector<8x32xf32>
    %cst_50 = arith.constant 9.99999974E-6 : f32
    %76 = vector.broadcast %cst_50 : f32 to vector<8x1xf32>
    %77 = arith.addf %73, %76 : vector<8x1xf32>
    %78 = math.rsqrt %77 : vector<8x1xf32>
    %79 = vector.broadcast %78 : vector<8x1xf32> to vector<8x32xf32>
    %80 = arith.mulf %75, %79 : vector<8x32xf32>
    %81 = vector.broadcast %61 : vector<1x32xf32> to vector<8x32xf32>
    %82 = arith.mulf %80, %81 : vector<8x32xf32>
    %83 = vector.broadcast %62 : vector<1x32xf32> to vector<8x32xf32>
    %84 = arith.addf %82, %83 : vector<8x32xf32>
    %c0_51 = arith.constant 0 : index
    %c0_52 = arith.constant 0 : index
    %85 = vector.load %arg17[%c0_51, %c0_52] : memref<32x32xf32, #tpu.memory_space<vmem>>, vector<32x32xf32>
    %c0_53 = arith.constant 0 : index
    %c0_54 = arith.constant 0 : index
    %86 = vector.load %arg18[%c0_53, %c0_54] : memref<1x32xf32, #tpu.memory_space<vmem>>, vector<1x32xf32>
    %c0_55 = arith.constant 0 : index
    %c0_56 = arith.constant 0 : index
    %87 = vector.load %arg19[%c0_55, %c0_56] : memref<32x32xf32, #tpu.memory_space<vmem>>, vector<32x32xf32>
    %c0_57 = arith.constant 0 : index
    %c0_58 = arith.constant 0 : index
    %88 = vector.load %arg20[%c0_57, %c0_58] : memref<1x32xf32, #tpu.memory_space<vmem>>, vector<1x32xf32>
    %c0_59 = arith.constant 0 : index
    %c0_60 = arith.constant 0 : index
    %89 = vector.load %arg21[%c0_59, %c0_60] : memref<32x32xf32, #tpu.memory_space<vmem>>, vector<32x32xf32>
    %c0_61 = arith.constant 0 : index
    %c0_62 = arith.constant 0 : index
    %90 = vector.load %arg22[%c0_61, %c0_62] : memref<1x32xf32, #tpu.memory_space<vmem>>, vector<1x32xf32>
    %c0_63 = arith.constant 0 : index
    %c0_64 = arith.constant 0 : index
    %91 = vector.load %arg23[%c0_63, %c0_64] : memref<32x32xf32, #tpu.memory_space<vmem>>, vector<32x32xf32>
    %c0_65 = arith.constant 0 : index
    %c0_66 = arith.constant 0 : index
    %92 = vector.load %arg24[%c0_65, %c0_66] : memref<1x32xf32, #tpu.memory_space<vmem>>, vector<1x32xf32>
    %cst_67 = arith.constant dense<0.000000e+00> : vector<8x32xf32>
    %93 = tpu.matmul %84, %85, %cst_67 {dimension_numbers = #tpu.dot_dimension_numbers<[1], [0], [0], [1], [0, 0, 1, 1], [], []>} : vector<8x32xf32>, vector<32x32xf32>, vector<8x32xf32> -> vector<8x32xf32>
    %94 = vector.broadcast %86 : vector<1x32xf32> to vector<8x32xf32>
    %95 = arith.addf %93, %94 : vector<8x32xf32>
    %cst_68 = arith.constant dense<0.000000e+00> : vector<8x32xf32>
    %96 = tpu.matmul %5, %87, %cst_68 {dimension_numbers = #tpu.dot_dimension_numbers<[1], [0], [0], [1], [0, 0, 1, 1], [], []>} : vector<8x32xf32>, vector<32x32xf32>, vector<8x32xf32> -> vector<8x32xf32>
    %97 = vector.broadcast %88 : vector<1x32xf32> to vector<8x32xf32>
    %98 = arith.addf %96, %97 : vector<8x32xf32>
    %cst_69 = arith.constant dense<0.000000e+00> : vector<8x32xf32>
    %99 = tpu.matmul %5, %89, %cst_69 {dimension_numbers = #tpu.dot_dimension_numbers<[1], [0], [0], [1], [0, 0, 1, 1], [], []>} : vector<8x32xf32>, vector<32x32xf32>, vector<8x32xf32> -> vector<8x32xf32>
    %100 = vector.broadcast %90 : vector<1x32xf32> to vector<8x32xf32>
    %101 = arith.addf %99, %100 : vector<8x32xf32>
    %102 = vector.shape_cast %95 : vector<8x32xf32> to vector<8x4x8xf32>
    %103 = vector.shape_cast %98 : vector<8x32xf32> to vector<8x4x8xf32>
    %104 = vector.shape_cast %101 : vector<8x32xf32> to vector<8x4x8xf32>
    "tpu.trace_start"() <{level = 10 : i32, message = "qhd,khd->hqk"}> : () -> ()
    %cst_70 = arith.constant dense<0.000000e+00> : vector<4x8x8xf32>
    %105 = tpu.matmul %102, %103, %cst_70 {dimension_numbers = #tpu.dot_dimension_numbers<[2], [2], [0], [0], [0, 1, 0, 0, 1, 0], [1], [1]>} : vector<8x4x8xf32>, vector<8x4x8xf32>, vector<4x8x8xf32> -> vector<4x8x8xf32>
    "tpu.trace_stop"() : () -> ()
    %cst_71 = arith.constant 0.353553385 : f32
    %106 = vector.broadcast %cst_71 : f32 to vector<4x8x8xf32>
    %107 = arith.mulf %105, %106 : vector<4x8x8xf32>
    %108 = vector.shape_cast %17 : vector<1x8xf32> to vector<1x1x8xf32>
    %109 = vector.broadcast %108 : vector<1x1x8xf32> to vector<4x8x8xf32>
    %110 = arith.addf %107, %109 : vector<4x8x8xf32>
    %cst_72 = arith.constant dense<0xFF800000> : vector<4x8xf32>
    %111 = vector.multi_reduction <maximumf>, %110, %cst_72 [2] : vector<4x8x8xf32> to vector<4x8xf32>
    %112 = vector.shape_cast %111 : vector<4x8xf32> to vector<4x8x1xf32>
    %113 = vector.broadcast %112 : vector<4x8x1xf32> to vector<4x8x8xf32>
    %114 = arith.subf %110, %113 : vector<4x8x8xf32>
    %115 = math.exp %114 : vector<4x8x8xf32>
    %cst_73 = arith.constant dense<0.000000e+00> : vector<4x8xf32>
    %116 = vector.multi_reduction <add>, %115, %cst_73 [2] : vector<4x8x8xf32> to vector<4x8xf32>
    %117 = vector.shape_cast %116 : vector<4x8xf32> to vector<4x8x1xf32>
    %118 = tpu.reciprocal %117 : vector<4x8x1xf32> -> vector<4x8x1xf32>
    %119 = vector.broadcast %118 : vector<4x8x1xf32> to vector<4x8x8xf32>
    %120 = arith.mulf %115, %119 : vector<4x8x8xf32>
    "tpu.trace_start"() <{level = 10 : i32, message = "hqk,khd->qhd"}> : () -> ()
    %cst_74 = arith.constant dense<0.000000e+00> : vector<4x8x8xf32>
    %121 = tpu.matmul %104, %120, %cst_74 {dimension_numbers = #tpu.dot_dimension_numbers<[0], [2], [2], [1], [0, 1, 0, 2, 1, 1], [1], [0]>} : vector<8x4x8xf32>, vector<4x8x8xf32>, vector<4x8x8xf32> -> vector<4x8x8xf32>
    %122 = tpu.transpose %121, [2, 0, 1] : vector<4x8x8xf32> -> vector<8x4x8xf32>
    "tpu.trace_stop"() : () -> ()
    %123 = vector.shape_cast %122 : vector<8x4x8xf32> to vector<8x32xf32>
    %cst_75 = arith.constant dense<0.000000e+00> : vector<8x32xf32>
    %124 = tpu.matmul %123, %91, %cst_75 {dimension_numbers = #tpu.dot_dimension_numbers<[1], [0], [0], [1], [0, 0, 1, 1], [], []>} : vector<8x32xf32>, vector<32x32xf32>, vector<8x32xf32> -> vector<8x32xf32>
    %125 = vector.broadcast %92 : vector<1x32xf32> to vector<8x32xf32>
    %126 = arith.addf %124, %125 : vector<8x32xf32>
    %127 = arith.addf %84, %126 : vector<8x32xf32>
    %c0_76 = arith.constant 0 : index
    %c0_77 = arith.constant 0 : index
    %128 = vector.load %arg25[%c0_76, %c0_77] : memref<1x32xf32, #tpu.memory_space<vmem>>, vector<1x32xf32>
    %c0_78 = arith.constant 0 : index
    %c0_79 = arith.constant 0 : index
    %129 = vector.load %arg26[%c0_78, %c0_79] : memref<1x32xf32, #tpu.memory_space<vmem>>, vector<1x32xf32>
    %cst_80 = arith.constant dense<0.000000e+00> : vector<8xf32>
    %130 = vector.multi_reduction <add>, %127, %cst_80 [1] : vector<8x32xf32> to vector<8xf32>
    %131 = vector.shape_cast %130 : vector<8xf32> to vector<8x1xf32>
    %cst_81 = arith.constant 3.200000e+01 : f32
    %132 = vector.broadcast %cst_81 : f32 to vector<8x1xf32>
    %133 = arith.divf %131, %132 : vector<8x1xf32>
    %134 = vector.broadcast %133 : vector<8x1xf32> to vector<8x32xf32>
    %135 = arith.subf %127, %134 : vector<8x32xf32>
    %136 = arith.mulf %135, %135 : vector<8x32xf32>
    %cst_82 = arith.constant dense<0.000000e+00> : vector<8xf32>
    %137 = vector.multi_reduction <add>, %136, %cst_82 [1] : vector<8x32xf32> to vector<8xf32>
    %138 = vector.shape_cast %137 : vector<8xf32> to vector<8x1xf32>
    %cst_83 = arith.constant 3.200000e+01 : f32
    %139 = vector.broadcast %cst_83 : f32 to vector<8x1xf32>
    %140 = arith.divf %138, %139 : vector<8x1xf32>
    %141 = vector.broadcast %133 : vector<8x1xf32> to vector<8x32xf32>
    %142 = arith.subf %127, %141 : vector<8x32xf32>
    %cst_84 = arith.constant 9.99999974E-6 : f32
    %143 = vector.broadcast %cst_84 : f32 to vector<8x1xf32>
    %144 = arith.addf %140, %143 : vector<8x1xf32>
    %145 = math.rsqrt %144 : vector<8x1xf32>
    %146 = vector.broadcast %145 : vector<8x1xf32> to vector<8x32xf32>
    %147 = arith.mulf %142, %146 : vector<8x32xf32>
    %148 = vector.broadcast %128 : vector<1x32xf32> to vector<8x32xf32>
    %149 = arith.mulf %147, %148 : vector<8x32xf32>
    %150 = vector.broadcast %129 : vector<1x32xf32> to vector<8x32xf32>
    %151 = arith.addf %149, %150 : vector<8x32xf32>
    %c0_85 = arith.constant 0 : index
    %c0_86 = arith.constant 0 : index
    %c0_87 = arith.constant 0 : index
    %c0_88 = arith.constant 0 : index
    %152 = vector.load %arg34[%c0_85, %c0_86, %c0_87, %c0_88] : memref<1x4x8x8xf32, #tpu.memory_space<vmem>>, vector<1x4x8x8xf32>
    %153 = vector.shape_cast %152 : vector<1x4x8x8xf32> to vector<4x8x8xf32>
    %154 = vector.shape_cast %120 : vector<4x8x8xf32> to vector<1x4x8x8xf32>
    tpu.vector_store %arg34[%c0_85, %c0_86, %c0_87, %c0_88], %154 {strides = array<i32>} : memref<1x4x8x8xf32, #tpu.memory_space<vmem>>, vector<1x4x8x8xf32>,
    %cst_89 = arith.constant 0.000000e+00 : f32
    %155 = vector.broadcast %cst_89 : f32 to vector<8x32xf32>
    %c0_90 = arith.constant 0 : index
    %c0_91 = arith.constant 0 : index
    %156 = vector.load %arg27[%c0_90, %c0_91] : memref<32x64xf32, #tpu.memory_space<vmem>>, vector<32x64xf32>
    %cst_92 = arith.constant dense<0.000000e+00> : vector<8x64xf32>
    %157 = tpu.matmul %151, %156, %cst_92 {dimension_numbers = #tpu.dot_dimension_numbers<[1], [0], [0], [1], [0, 0, 1, 1], [], []>} : vector<8x32xf32>, vector<32x64xf32>, vector<8x64xf32> -> vector<8x64xf32>
    %c0_93 = arith.constant 0 : index
    %c0_94 = arith.constant 0 : index
    %158 = vector.load %arg28[%c0_93, %c0_94] : memref<1x64xf32, #tpu.memory_space<vmem>>, vector<1x64xf32>
    %159 = vector.broadcast %158 : vector<1x64xf32> to vector<8x64xf32>
    %160 = arith.addf %157, %159 : vector<8x64xf32>
    %cst_95 = arith.constant 0.000000e+00 : f32
    %161 = vector.broadcast %cst_95 : f32 to vector<8x64xf32>
    %162 = arith.maximumf %160, %161 : vector<8x64xf32>
    %c0_96 = arith.constant 0 : index
    %c0_97 = arith.constant 0 : index
    %163 = vector.load %arg29[%c0_96, %c0_97] : memref<64x32xf32, #tpu.memory_space<vmem>>, vector<64x32xf32>
    %cst_98 = arith.constant dense<0.000000e+00> : vector<8x32xf32>
    %164 = tpu.matmul %162, %163, %cst_98 {dimension_numbers = #tpu.dot_dimension_numbers<[1], [0], [0], [1], [0, 0, 1, 1], [], []>} : vector<8x64xf32>, vector<64x32xf32>, vector<8x32xf32> -> vector<8x32xf32>
    %165 = arith.addf %155, %164 : vector<8x32xf32>
    %c0_99 = arith.constant 0 : index
    %c0_100 = arith.constant 0 : index
    %166 = vector.load %arg30[%c0_99, %c0_100] : memref<1x32xf32, #tpu.memory_space<vmem>>, vector<1x32xf32>
    %167 = vector.broadcast %166 : vector<1x32xf32> to vector<8x32xf32>
    %168 = arith.addf %165, %167 : vector<8x32xf32>
    %169 = arith.addf %151, %168 : vector<8x32xf32>
    %c0_101 = arith.constant 0 : index
    %c0_102 = arith.constant 0 : index
    %170 = vector.load %arg31[%c0_101, %c0_102] : memref<1x32xf32, #tpu.memory_space<vmem>>, vector<1x32xf32>
    %c0_103 = arith.constant 0 : index
    %c0_104 = arith.constant 0 : index
    %171 = vector.load %arg32[%c0_103, %c0_104] : memref<1x32xf32, #tpu.memory_space<vmem>>, vector<1x32xf32>
    %cst_105 = arith.constant dense<0.000000e+00> : vector<8xf32>
    %172 = vector.multi_reduction <add>, %169, %cst_105 [1] : vector<8x32xf32> to vector<8xf32>
    %173 = vector.shape_cast %172 : vector<8xf32> to vector<8x1xf32>
    %cst_106 = arith.constant 3.200000e+01 : f32
    %174 = vector.broadcast %cst_106 : f32 to vector<8x1xf32>
    %175 = arith.divf %173, %174 : vector<8x1xf32>
    %176 = vector.broadcast %175 : vector<8x1xf32> to vector<8x32xf32>
    %177 = arith.subf %169, %176 : vector<8x32xf32>
    %178 = arith.mulf %177, %177 : vector<8x32xf32>
    %cst_107 = arith.constant dense<0.000000e+00> : vector<8xf32>
    %179 = vector.multi_reduction <add>, %178, %cst_107 [1] : vector<8x32xf32> to vector<8xf32>
    %180 = vector.shape_cast %179 : vector<8xf32> to vector<8x1xf32>
    %cst_108 = arith.constant 3.200000e+01 : f32
    %181 = vector.broadcast %cst_108 : f32 to vector<8x1xf32>
    %182 = arith.divf %180, %181 : vector<8x1xf32>
    %183 = vector.broadcast %175 : vector<8x1xf32> to vector<8x32xf32>
    %184 = arith.subf %169, %183 : vector<8x32xf32>
    %cst_109 = arith.constant 9.99999974E-6 : f32
    %185 = vector.broadcast %cst_109 : f32 to vector<8x1xf32>
    %186 = arith.addf %182, %185 : vector<8x1xf32>
    %187 = math.rsqrt %186 : vector<8x1xf32>
    %188 = vector.broadcast %187 : vector<8x1xf32> to vector<8x32xf32>
    %189 = arith.mulf %184, %188 : vector<8x32xf32>
    %190 = vector.broadcast %170 : vector<1x32xf32> to vector<8x32xf32>
    %191 = arith.mulf %189, %190 : vector<8x32xf32>
    %192 = vector.broadcast %171 : vector<1x32xf32> to vector<8x32xf32>
    %193 = arith.addf %191, %192 : vector<8x32xf32>
    %c0_110 = arith.constant 0 : index
    %c0_111 = arith.constant 0 : index
    %c0_112 = arith.constant 0 : index
    %194 = vector.load %arg33[%c0_110, %c0_111, %c0_112] : memref<1x8x32xf32, #tpu.memory_space<vmem>>, vector<1x8x32xf32>
    %195 = vector.shape_cast %194 : vector<1x8x32xf32> to vector<8x32xf32>
    %196 = vector.shape_cast %193 : vector<8x32xf32> to vector<1x8x32xf32>
    tpu.vector_store %arg33[%c0_110, %c0_111, %c0_112], %196 {strides = array<i32>} : memref<1x8x32xf32, #tpu.memory_space<vmem>>, vector<1x8x32xf32>,
    return
  }
  func.func @transform_0(%arg0: i32, %arg1: i32) -> (i32, i32, i32) {
    %c0_i32 = arith.constant 0 : i32
    %c0_i32_0 = arith.constant 0 : i32
    return %arg0, %arg1, %c0_i32 : i32, i32, i32
  }
  func.func @transform_1(%arg0: i32, %arg1: i32) -> (i32, i32, i32) {
    %c0_i32 = arith.constant 0 : i32
    %c0_i32_0 = arith.constant 0 : i32
    %c0_i32_1 = arith.constant 0 : i32
    return %arg0, %c0_i32, %c0_i32_0 : i32, i32, i32
  }
  func.func @transform_2(%arg0: i32, %arg1: i32) -> (i32, i32, i32) {
    %c0_i32 = arith.constant 0 : i32
    %c0_i32_0 = arith.constant 0 : i32
    %c0_i32_1 = arith.constant 0 : i32
    return %arg0, %c0_i32, %c0_i32_0 : i32, i32, i32
  }
  func.func @transform_3(%arg0: i32, %arg1: i32) -> (i32, i32, i32) {
    %c0_i32 = arith.constant 0 : i32
    %c0_i32_0 = arith.constant 0 : i32
    return %arg0, %arg1, %c0_i32 : i32, i32, i32
  }
  func.func @transform_4(%arg0: i32, %arg1: i32) -> (i32, i32, i32) {
    %c0_i32 = arith.constant 0 : i32
    %c0_i32_0 = arith.constant 0 : i32
    %c0_i32_1 = arith.constant 0 : i32
    return %arg0, %c0_i32, %c0_i32_0 : i32, i32, i32
  }
  func.func @transform_5(%arg0: i32, %arg1: i32) -> (i32, i32) {
    %c0_i32 = arith.constant 0 : i32
    %c0_i32_0 = arith.constant 0 : i32
    %c0_i32_1 = arith.constant 0 : i32
    return %c0_i32, %c0_i32_0 : i32, i32
  }
  func.func @transform_6(%arg0: i32, %arg1: i32) -> (i32, i32) {
    %c0_i32 = arith.constant 0 : i32
    %c0_i32_0 = arith.constant 0 : i32
    %c0_i32_1 = arith.constant 0 : i32
    return %c0_i32, %c0_i32_0 : i32, i32
  }
  func.func @transform_7(%arg0: i32, %arg1: i32) -> (i32, i32) {
    %c0_i32 = arith.constant 0 : i32
    %c0_i32_0 = arith.constant 0 : i32
    %c0_i32_1 = arith.constant 0 : i32
    return %c0_i32, %c0_i32_0 : i32, i32
  }
  func.func @transform_8(%arg0: i32, %arg1: i32) -> (i32, i32) {
    %c0_i32 = arith.constant 0 : i32
    %c0_i32_0 = arith.constant 0 : i32
    %c0_i32_1 = arith.constant 0 : i32
    return %c0_i32, %c0_i32_0 : i32, i32
  }
  func.func @transform_9(%arg0: i32, %arg1: i32) -> (i32, i32) {
    %c0_i32 = arith.constant 0 : i32
    %c0_i32_0 = arith.constant 0 : i32
    %c0_i32_1 = arith.constant 0 : i32
    return %c0_i32, %c0_i32_0 : i32, i32
  }
  func.func @transform_10(%arg0: i32, %arg1: i32) -> (i32, i32) {
    %c0_i32 = arith.constant 0 : i32
    %c0_i32_0 = arith.constant 0 : i32
    %c0_i32_1 = arith.constant 0 : i32
    return %c0_i32, %c0_i32_0 : i32, i32
  }
  func.func @transform_11(%arg0: i32, %arg1: i32) -> (i32, i32) {
    %c0_i32 = arith.constant 0 : i32
    %c0_i32_0 = arith.constant 0 : i32
    %c0_i32_1 = arith.constant 0 : i32
    return %c0_i32, %c0_i32_0 : i32, i32
  }
  func.func @transform_12(%arg0: i32, %arg1: i32) -> (i32, i32) {
    %c0_i32 = arith.constant 0 : i32
    %c0_i32_0 = arith.constant 0 : i32
    %c0_i32_1 = arith.constant 0 : i32
    return %c0_i32, %c0_i32_0 : i32, i32
  }
  func.func @transform_13(%arg0: i32, %arg1: i32) -> (i32, i32) {
    %c0_i32 = arith.constant 0 : i32
    %c0_i32_0 = arith.constant 0 : i32
    %c0_i32_1 = arith.constant 0 : i32
    return %c0_i32, %c0_i32_0 : i32, i32
  }
  func.func @transform_14(%arg0: i32, %arg1: i32) -> (i32, i32) {
    %c0_i32 = arith.constant 0 : i32
    %c0_i32_0 = arith.constant 0 : i32
    %c0_i32_1 = arith.constant 0 : i32
    return %c0_i32, %c0_i32_0 : i32, i32
  }
  func.func @transform_15(%arg0: i32, %arg1: i32) -> (i32, i32) {
    %c0_i32 = arith.constant 0 : i32
    %c0_i32_0 = arith.constant 0 : i32
    %c0_i32_1 = arith.constant 0 : i32
    return %c0_i32, %c0_i32_0 : i32, i32
  }
  func.func @transform_16(%arg0: i32, %arg1: i32) -> (i32, i32) {
    %c0_i32 = arith.constant 0 : i32
    %c0_i32_0 = arith.constant 0 : i32
    %c0_i32_1 = arith.constant 0 : i32
    return %c0_i32, %c0_i32_0 : i32, i32
  }
  func.func @transform_17(%arg0: i32, %arg1: i32) -> (i32, i32) {
    %c0_i32 = arith.constant 0 : i32
    %c0_i32_0 = arith.constant 0 : i32
    %c0_i32_1 = arith.constant 0 : i32
    return %c0_i32, %c0_i32_0 : i32, i32
  }
  func.func @transform_18(%arg0: i32, %arg1: i32) -> (i32, i32) {
    %c0_i32 = arith.constant 0 : i32
    %c0_i32_0 = arith.constant 0 : i32
    %c0_i32_1 = arith.constant 0 : i32
    return %c0_i32, %c0_i32_0 : i32, i32
  }
  func.func @transform_19(%arg0: i32, %arg1: i32) -> (i32, i32) {
    %c0_i32 = arith.constant 0 : i32
    %c0_i32_0 = arith.constant 0 : i32
    %c0_i32_1 = arith.constant 0 : i32
    return %c0_i32, %c0_i32_0 : i32, i32
  }
  func.func @transform_20(%arg0: i32, %arg1: i32) -> (i32, i32) {
    %c0_i32 = arith.constant 0 : i32
    %c0_i32_0 = arith.constant 0 : i32
    %c0_i32_1 = arith.constant 0 : i32
    return %c0_i32, %c0_i32_0 : i32, i32
  }
  func.func @transform_21(%arg0: i32, %arg1: i32) -> (i32, i32) {
    %c0_i32 = arith.constant 0 : i32
    %c0_i32_0 = arith.constant 0 : i32
    %c0_i32_1 = arith.constant 0 : i32
    return %c0_i32, %c0_i32_0 : i32, i32
  }
  func.func @transform_22(%arg0: i32, %arg1: i32) -> (i32, i32) {
    %c0_i32 = arith.constant 0 : i32
    %c0_i32_0 = arith.constant 0 : i32
    %c0_i32_1 = arith.constant 0 : i32
    return %c0_i32, %c0_i32_0 : i32, i32
  }
  func.func @transform_23(%arg0: i32, %arg1: i32) -> (i32, i32) {
    %c0_i32 = arith.constant 0 : i32
    %c0_i32_0 = arith.constant 0 : i32
    %c0_i32_1 = arith.constant 0 : i32
    return %c0_i32, %c0_i32_0 : i32, i32
  }
  func.func @transform_24(%arg0: i32, %arg1: i32) -> (i32, i32) {
    %c0_i32 = arith.constant 0 : i32
    %c0_i32_0 = arith.constant 0 : i32
    %c0_i32_1 = arith.constant 0 : i32
    return %c0_i32, %c0_i32_0 : i32, i32
  }
  func.func @transform_25(%arg0: i32, %arg1: i32) -> (i32, i32) {
    %c0_i32 = arith.constant 0 : i32
    %c0_i32_0 = arith.constant 0 : i32
    %c0_i32_1 = arith.constant 0 : i32
    return %c0_i32, %c0_i32_0 : i32, i32
  }
  func.func @transform_26(%arg0: i32, %arg1: i32) -> (i32, i32) {
    %c0_i32 = arith.constant 0 : i32
    %c0_i32_0 = arith.constant 0 : i32
    %c0_i32_1 = arith.constant 0 : i32
    return %c0_i32, %c0_i32_0 : i32, i32
  }
  func.func @transform_27(%arg0: i32, %arg1: i32) -> (i32, i32) {
    %c0_i32 = arith.constant 0 : i32
    %c0_i32_0 = arith.constant 0 : i32
    %c0_i32_1 = arith.constant 0 : i32
    return %c0_i32, %c0_i32_0 : i32, i32
  }
  func.func @transform_28(%arg0: i32, %arg1: i32) -> (i32, i32) {
    %c0_i32 = arith.constant 0 : i32
    %c0_i32_0 = arith.constant 0 : i32
    %c0_i32_1 = arith.constant 0 : i32
    return %c0_i32, %c0_i32_0 : i32, i32
  }
  func.func @transform_29(%arg0: i32, %arg1: i32) -> (i32, i32) {
    %c0_i32 = arith.constant 0 : i32
    %c0_i32_0 = arith.constant 0 : i32
    %c0_i32_1 = arith.constant 0 : i32
    return %c0_i32, %c0_i32_0 : i32, i32
  }
  func.func @transform_30(%arg0: i32, %arg1: i32) -> (i32, i32) {
    %c0_i32 = arith.constant 0 : i32
    %c0_i32_0 = arith.constant 0 : i32
    %c0_i32_1 = arith.constant 0 : i32
    return %c0_i32, %c0_i32_0 : i32, i32
  }
  func.func @transform_31(%arg0: i32, %arg1: i32) -> (i32, i32, i32) {
    %c0_i32 = arith.constant 0 : i32
    %c0_i32_0 = arith.constant 0 : i32
    return %arg0, %arg1, %c0_i32 : i32, i32, i32
  }
  func.func @transform_32(%arg0: i32, %arg1: i32) -> (i32, i32, i32, i32) {
    %c0_i32 = arith.constant 0 : i32
    %c0_i32_0 = arith.constant 0 : i32
    %c0_i32_1 = arith.constant 0 : i32
    return %arg0, %c0_i32, %arg1, %c0_i32_0 : i32, i32, i32, i32
  }
}

</mosaic_0001>

<bundles_post_ra>
// kernel: tpu_custom_call.1
= control target key start
LH: loop header
LB: loop body
LE: loop exit
PB: predicated region body
PF: predicated region fallthrough
CT: control target
= control target key end

     0   :  { %s4464_s6 = smov 1   ;;  %s4465_s10 = smov 2   ;;  %s5269_s0 = inlined_call_operand.smem [shape: u32[33], index: -1, kind: input, shape index: {}] }
   0x1   :  { %s4522_s5 = sld [smem:[%s5269_s0]]   ;;  %s4466_s14 = smov 3  }
   0x2   :  { %s4527_s9 = sld [smem:[%s5269_s0 + %s4464_s6]]   ;;  %s4467_s18 = smov 4  }
   0x3   :  { %s4532_s13 = sld [smem:[%s5269_s0 + %s4465_s10]]   ;;  %s4468_s22 = smov 5  }
   0x4   :  { %s4537_s17 = sld [smem:[%s5269_s0 + %s4466_s14]]   ;;  %s4469_s26 = smov 6  }
   0x5   :  { %s4542_s21 = sld [smem:[%s5269_s0 + %s4467_s18]]   ;;  %s4470_s30 = smov 7  }
   0x6   :  { %s4547_s25 = sld [smem:[%s5269_s0 + %s4468_s22]]   ;;  %s4471_s4 = smov 8  }
   0x7   :  { %s4552_s29 = sld [smem:[%s5269_s0 + %s4469_s26]]   ;;  %s4472_s10 = smov 9  }
   0x8   :  { %5292 = sst [smem:[#allocation31_spill]] %s4527_s9  ;;  %s4473_s15 = smov 10  }
   0x9   :  { %s4557_s3 = sld [smem:[%s5269_s0 + %s4470_s30]]   ;;  %s4474_s20 = smov 11  }
   0xa   :  { %s4562_s8 = sld [smem:[%s5269_s0 + %s4471_s4]]   ;;  %s4475_s26 = smov 12  }
   0xb   :  { %5293 = sst [smem:[#allocation32_spill]] %s4542_s21  ;;  %s4476_s1 = smov 13  }
   0xc   :  { %s4567_s14 = sld [smem:[%s5269_s0 + %s4472_s10]]   ;;  %s4477_s7 = smov 14  }
   0xd   :  { %5294 = sst [smem:[#allocation33_spill]] %s4552_s29  ;;  %s4479_s22 = smov 16  }
   0xe   :  { %s4572_s19 = sld [smem:[%s5269_s0 + %s4473_s15]]   ;;  %s4478_s15 = smov 15  }
   0xf   :  { %s4577_s24 = sld [smem:[%s5269_s0 + %s4474_s20]]   ;;  %s4480_s28 = smov 17  }
  0x10   :  { %5295 = sst [smem:[#allocation34_spill]] %s4562_s8 }
  0x11   :  { %s4582_s30 = sld [smem:[%s5269_s0 + %s4475_s26]]  }
  0x12   :  { %5296 = sst [smem:[#allocation35_spill]] %s4567_s14 }
  0x13   :  { %s4587_s6 = sld [smem:[%s5269_s0 + %s4476_s1]]  }
  0x14   :  { %5297 = sst [smem:[#allocation36_spill]] %s4572_s19 }
  0x15   :  { %5298 = sst [smem:[#allocation37_spill]] %s4577_s24 }
  0x16   :  { %s4592_s12 = sld [smem:[%s5269_s0 + %s4477_s7]]   ;;  %s4481_s7 = smov 18  }
  0x17   :  { %5299 = sst [smem:[#allocation38_spill]] %s4582_s30 }
  0x18   :  { %s4597_s20 = sld [smem:[%s5269_s0 + %s4478_s15]]   ;;  %s4482_s15 = smov 19  }
  0x19   :  { %5300 = sst [smem:[#allocation39_spill]] %s4587_s6 }
  0x1a   :  { %s4602_s27 = sld [smem:[%s5269_s0 + %s4479_s22]]   ;;  %s4483_s22 = smov 20  }
  0x1b   :  { %s4607_s4 = sld [smem:[%s5269_s0 + %s4480_s28]]   ;;  %s4484_s28 = smov 21  }
  0x1c   :  { %5301 = sst [smem:[#allocation40_spill]] %s4592_s12 }
  0x1d   :  { %s4612_s21 = sld [smem:[%s5269_s0 + %s4481_s7]]   ;;  %s4485_s7 = smov 22  }
  0x1e   :  { %5302 = sst [smem:[#allocation41_spill]] %s4597_s20 }
  0x1f   :  { %s4617_s12 = sld [smem:[%s5269_s0 + %s4482_s15]]   ;;  %s4486_s15 = smov 23  }
  0x20   :  { %5303 = sst [smem:[#allocation42_spill]] %s4602_s27 }
  0x21   :  { %s4622_s27 = sld [smem:[%s5269_s0 + %s4483_s22]]   ;;  %s4487_s22 = smov 24  }
  0x22   :  { %s4627_s6 = sld [smem:[%s5269_s0 + %s4484_s28]]   ;;  %s4488_s28 = smov 25  }
  0x23   :  { %5304 = sst [smem:[#allocation43_spill]] %s4612_s21 }
  0x24   :  { %s4632_s21 = sld [smem:[%s5269_s0 + %s4485_s7]]   ;;  %s4489_s7 = smov 26  }
  0x25   :  { %5305 = sst [smem:[#allocation44_spill]] %s4617_s12 }
  0x26   :  { %s4637_s30 = sld [smem:[%s5269_s0 + %s4486_s15]]   ;;  %s4490_s15 = smov 27  }
  0x27   :  { %5306 = sst [smem:[#allocation45_spill]] %s4622_s27 }
  0x28   :  { %s4642_s27 = sld [smem:[%s5269_s0 + %s4487_s22]]   ;;  %s4491_s22 = smov 28  }
  0x29   :  { %s4647_s19 = sld [smem:[%s5269_s0 + %s4488_s28]]   ;;  %s4492_s28 = smov 29  }
  0x2a   :  { %5307 = sst [smem:[#allocation46_spill]] %s4632_s21 }
  0x2b   :  { %s4652_s21 = sld [smem:[%s5269_s0 + %s4489_s7]]   ;;  %s4493_s7 = smov 30  }
  0x2c   :  { %5308 = sst [smem:[#allocation47_spill]] %s4637_s30 }
  0x2d   :  { %s4657_s30 = sld [smem:[%s5269_s0 + %s4490_s15]]   ;;  %s4494_s15 = smov 31  }
  0x2e   :  { %5309 = sst [smem:[#allocation48_spill]] %s4642_s27 }
  0x2f   :  { %s4662_s27 = sld [smem:[%s5269_s0 + %s4491_s22]]   ;;  %s4495_s22 = smov 32  }
  0x30   :  { %s4667_s14 = sld [smem:[%s5269_s0 + %s4492_s28]]  }
  0x31   :  { %5310 = sst [smem:[#allocation49_spill]] %s4652_s21 }
  0x32   :  { %s4672_s21 = sld [smem:[%s5269_s0 + %s4493_s7]]  }
  0x33   :  { %5311 = sst [smem:[#allocation50_spill]] %s4657_s30 }
  0x34   :  { %s4677_s30 = sld [smem:[%s5269_s0 + %s4494_s15]]  }
  0x35   :  { %5312 = sst [smem:[#allocation51_spill]] %s4662_s27 }
  0x36   :  { %5313 = sst [smem:[#allocation52_spill]] %s4667_s14 }
  0x37   :  { %s4682_s27 = sld [smem:[%s5269_s0 + %s4495_s22]]  }
  0x38   :  { %5314 = sst [smem:[#allocation53_spill]] %s4672_s21 }
  0x3a   :  { %5315 = sst [smem:[#allocation54_spill]] %s4677_s30 }
  0x3d   :  { %5316 = sst [smem:[#allocation55_spill]] %s4682_s27 }
  0x3e   :  { %71 = vsyncpa [#allocation3], 0 }
  0x3f   :  { %73 = vsyncpa [#allocation3 + $0x1], 0 }
  0x40   :  { %74 = vsyncpa [#allocation6], 0 }
  0x41   :  { %76 = vsyncpa [#allocation6 + $0x1], 0 }
  0x42   :  { %77 = vsyncpa [#allocation9], 0 }
  0x43   :  { %79 = vsyncpa [#allocation9 + $0x1], 0 }
  0x44   :  { %80 = vsyncpa [#allocation12], 0 }
  0x45   :  { %81 = vsyncpa [#allocation15], 0 }
  0x46   :  { %82 = vsyncpa [#allocation18], 0 }
  0x47   :  { %83 = vsyncpa [#allocation4], 0 }
  0x48   :  { %85 = vsyncpa [#allocation4 + $0x1], 0 }
  0x49   :  { %86 = vsyncpa [#allocation21], 0 }
  0x4a   :  { %88 = vsyncpa [#allocation21 + $0x1], 0  ;;  %s4684_s28 = smov 0   ;;  %s4686_s1 = smov 0  }
  0x4b   :  { %s4688_s2 = smov 0   ;;  %s4690_s0 = smov 0  }
  0x4c   :  { %s4692_s7 = smov 0   ;;  %s4694_s10 = smov 0  }
  0x4d LB: > { %s5317_s9 = sld [smem:[#allocation31_spill]]  ;;  %s4715_s11 = sadd.s32 4294967295, %s4462_s10   ;;  %s4454_s0 = sphi %s4690_s0, %s5377_s0   ;;  %s4450_s2 = sphi %s4688_s2, %s5381_s2   ;;  %s4446_s1 = sphi %s4686_s1, %s5380_s1   ;;  %s4442_s28 = sphi %s4684_s28, %s5379_s28   ;;  %s4462_s10 = sphi %s4694_s10, %s94_s10   ;;  %s4458_s7 = sphi %s4692_s7, %s5378_s7  }
  0x4e   : > { %s5318_s20 = sld [smem:[#allocation41_spill]]  ;;  %p3688_p0 = scmp.ge.s32.totalorder %s4462_s10, 1 }
  0x4f   : > { %s5319_s12 = sld [smem:[#allocation44_spill]]  ;;  %p5286_p1 = scmp.eq.s32.totalorder %s4715_s11, 0 }
  0x50   : > { %s5320_s24 = sld [smem:[#allocation37_spill]]  ;;  %p847_p2 = scmp.lt.s32.totalorder %s4462_s10, 3 }
  0x51   : > { %5321 = sst [smem:[#allocation56_spill]] %s4442_s28  ;;  %s4496_s18 = smov [#allocation10]  }
  0x52   : > { %5322 = sst [smem:[#allocation57_spill]] %s4454_s0  ;;  %p4721_p3 = pnand %p3688_p0, %p847_p2 }
  0x53   : > { %5323 = sst [smem:[#allocation58_spill]] %s4458_s7  ;;  %s878_s22 = sshll.u32 %s4496_s18, 4  ;;  %s879_s22 = int_to_ptr.vmem [resolvable:$true] %s878_s22 }
  0x54   : > { %p3795_p4 = pneg %p4721_p3  ;;  %s899_s26 = sshll.u32 %s5318_s20, 4  ;;  %s4735_s26 = int_to_ptr.hbm [resolvable:$true] %s899_s26 }
  0x56   : > { %s876_s15 = sshll.u32 %s5320_s24, 4  ;;  %p4729_p5 = pnand %p3795_p4, %p5286_p1  ;;  %s877_s15 = int_to_ptr.hbm [resolvable:$true] %s876_s15 }
  0x57   : > { %s4024_s21 = sshra.s32 %s877_s15, 4  ;;  %s4031_s18 = scalar_lea.hbm %s5320_s24, 32  ;;  %s4025_s21 = int_to_ptr.hbm [resolvable:$true] %s4024_s21 }
  0x58   : > { %s4026_s30 = scalar_lea.hbm %s4025_s21, 32  ;;  %p4739_p8 = pneg %p4729_p5 }
  0x59   : > { %p4027_p7 = scmp.ne.s32.totalorder %s4025_s21, %s4026_s30  ;;  %p4032_p11 = scmp.lt.s32.totalorder %s4025_s21, %s5320_s24 }
  0x5a   : > { %p4033_p12 = scmp.lt.s32.totalorder %s4031_s18, %s4026_s30 }
  0x5b   : > { %p4029_p9 = pnand %p4739_p8, %p4027_p7 }
  0x5c   : > { %p4034_p13 = por %p4033_p12, %p4032_p11 }
  0x5d   : > { %p4030_p10 = pneg %p4029_p9 }
  0x5f   : > { %p4035_p0 = pnand %p4034_p13, %p4030_p10 }
  0x61   : > { %4038 = shalt.err (!%p4035_p0)
}
  0x62   : > { %s5276_s27 = smov 128   ;;  %s5278_s0 = smov 8  }
  0x63   : > { %3798 = dma.hbm_to_vmem [thread:$0]  (!%p4729_p5), %s877_s15, 512, %s879_s22, [#allocation9], %s5276_s27, %s5276_s27, %s5278_s0  }
  0x64   : > { %s4499_s8 = smov [#allocation11]   ;;  %s933_s21 = sshll.u32 %s5319_s12, 4  ;;  %s4753_s21 = int_to_ptr.hbm [resolvable:$true] %s933_s21 }
  0x65   : > { %s901_s29 = sshll.u32 %s4499_s8, 4  ;;  %s4054_s30 = sshra.s32 %s4735_s26, 4  ;;  %s902_s29 = int_to_ptr.vmem [resolvable:$true] %s901_s29  ;;  %s4055_s30 = int_to_ptr.hbm [resolvable:$true] %s4054_s30 }
  0x66   : > { %s4056_s18 = scalar_lea.hbm %s4055_s30, 32  ;;  %s4061_s24 = scalar_lea.hbm %s5318_s20, 32 }
  0x67   : > { %p4057_p2 = scmp.ne.s32.totalorder %s4055_s30, %s4056_s18  ;;  %p4062_p9 = scmp.lt.s32.totalorder %s4055_s30, %s5318_s20 }
  0x68   : > { %p4063_p10 = scmp.lt.s32.totalorder %s4061_s24, %s4056_s18 }
  0x69   : > { %p4059_p4 = pnand %p4057_p2, %p4739_p8 }
  0x6a   : > { %p4064_p11 = por %p4063_p10, %p4062_p9 }
  0x6b   : > { %p4060_p7 = pneg %p4059_p4 }
  0x6d   : > { %p4065_p12 = pnand %p4064_p11, %p4060_p7 }
  0x6f   : > { %4068 = shalt.err (!%p4065_p12)
}
  0x70   : > { %3801 = dma.hbm_to_vmem [thread:$0]  (!%p4729_p5), %s4735_s26, 512, %s902_s29, [#allocation12], %s5276_s27, %s5276_s27, %s5278_s0  }
  0x71   : > { %s4500_s8 = smov [#allocation14]   ;;  %s4084_s22 = sshra.s32 %s4753_s21, 4  ;;  %s4085_s22 = int_to_ptr.hbm [resolvable:$true] %s4084_s22 }
  0x72   : > { %s935_s15 = sshll.u32 %s4500_s8, 4  ;;  %s4086_s24 = scalar_lea.hbm %s4085_s22, 32  ;;  %s936_s15 = int_to_ptr.vmem [resolvable:$true] %s935_s15 }
  0x73   : > { %p4087_p13 = scmp.ne.s32.totalorder %s4085_s22, %s4086_s24  ;;  %s4091_s30 = scalar_lea.hbm %s5319_s12, 32 }
  0x74   : > { %p4092_p4 = scmp.lt.s32.totalorder %s4085_s22, %s5319_s12  ;;  %p4093_p7 = scmp.lt.s32.totalorder %s4091_s30, %s4086_s24 }
  0x75   : > { %p4089_p0 = pnand %p4087_p13, %p4739_p8 }
  0x76   : > { %p4094_p9 = por %p4093_p7, %p4092_p4 }
  0x77   : > { %p4090_p2 = pneg %p4089_p0 }
  0x79   : > { %p4095_p10 = pnand %p4094_p9, %p4090_p2 }
  0x7b   : > { %4098 = shalt.err (!%p4095_p10)
}
  0x7c   : > { %3807 = dma.hbm_to_vmem [thread:$0]  (!%p4729_p5), %s4753_s21, 512, %s936_s15, [#allocation15], %s5276_s27, %s5276_s27, %s5278_s0  }
  0x7d   : > { %s3687_s29 = sadd.s32 4294967294, %s4462_s10   ;;  %s106_s26 = sadd.s32 1, %s4458_s7 }
  0x7e   : > { %s115_s18 = sadd.s32 1, %s4450_s2  ;;  %p108_p11 = scmp.ge.s32.totalorder %s106_s26, 2 }
  0x7f   : > { %p122_p12 = scmp.ne.s32.totalorder %s4450_s2, %s4446_s1  ;;  %p123_p13 = scmp.eq.s32.totalorder %s4462_s10, 0 }
  0x80   : > { %p128_p0 = scmp.ne.s32.totalorder %s4446_s1, %s4442_s28  ;;  %s5383_s26 = smov (%p108_p11, %s106_s26), 0 }
  0x81   : > { %5327 = sst [smem:[#allocation59_spill]] %s5383_s26  ;;  %p4787_p2 = por %p123_p13, %p122_p12 }
  0x82   : > { %p4793_p4 = por %p5286_p1, %p128_p0  ;;  %s110_s15 = ssub.s32 %s4458_s7, %s5383_s26 }
  0x83   : > { %p806_p7 = scmp.eq.s32.totalorder %s4715_s11, 1  ;;  %p113_p9 = scmp.eq.s32.totalorder %s110_s15, 0 }
  0x84   : > { %p812_p10 = scmp.eq.s32.totalorder %s3687_s29, 1  ;;  %p3840_p11 = scmp.lt.s32.totalorder %s4462_s10, 2 }
  0x85   : > { %p4800_p6 = por %p806_p7, %p122_p12  ;;  %s5283_s27 = sand.u32 1, %s4450_s2  }
  0x86   : > { %s4806_s24 = scalar_select %p113_p9, %s4450_s2, %s115_s18  }
  0x87   : > { %s5330_s22 = scalar_select %p4800_p6, 1, 0 }
  0x88   : > { %5332 = sst [smem:[#allocation61_spill]] %s4806_s24  ;;  %p4808_p13 = por %p812_p10, %p128_p0 }
  0x89   : > { %5331 = sst [smem:[#allocation60_spill]] %s5330_s22  ;;  %s4815_s0 = sshll.u32 %s5283_s27, 3 }
  0x8a   : > { %s5333_s30 = scalar_select %p4808_p13, 1, 0 }
  0x8b   : > { %s4818_s12 = sshll.u32 %s4458_s7, 3  ;;  %p4822_p12 = pnand %p3840_p11, %p4787_p2 }
  0x8c   : > { %5334 = sst [smem:[#allocation62_spill]] %s5333_s30  ;;  %s5287_s18 = sand.u32 1, %s4462_s10  }
  0x8d   : > { %s1032_s15 = scalar_lea.hbm %s5317_s9, %s4818_s12  ;;  %s1028_s26 = scalar_lea.vmem [#allocation5], %s4815_s0 }
  0x8e   : > { %s1034_s20 = sshll.u32 %s1032_s15, 4  ;;  %s1036_s24 = sshll.u32 %s1028_s26, 4  ;;  %s1035_s20 = int_to_ptr.hbm [resolvable:$true] %s1034_s20  ;;  %s1037_s24 = int_to_ptr.vmem [resolvable:$true] %s1036_s24 }
  0x8f   : > { %s4832_s27 = scalar_lea.sflag [#allocation6], %s5287_s18  ;;  %s4114_s8 = sshra.s32 %s1035_s20, 4  ;;  %s4115_s8 = int_to_ptr.hbm [resolvable:$true] %s4114_s8 }
  0x90   : > { %s4116_s7 = scalar_lea.hbm %s4115_s8, 8  ;;  %p4118_p2 = pneg %p4822_p12 }
  0x91   : > { %p4117_p0 = scmp.ne.s32.totalorder %s4115_s8, %s4116_s7  ;;  %s4121_s30 = scalar_lea.hbm %s5317_s9, 16 }
  0x92   : > { %p4122_p10 = scmp.lt.s32.totalorder %s4115_s8, %s5317_s9  ;;  %p4123_p11 = scmp.lt.s32.totalorder %s4121_s30, %s4116_s7 }
  0x93   : > { %p4119_p7 = pnand %p4118_p2, %p4117_p0 }
  0x94   : > { %p4124_p1 = por %p4123_p11, %p4122_p10 }
  0x95   : > { %p4120_p9 = pneg %p4119_p7 }
  0x97   : > { %p4125_p13 = pnand %p4124_p1, %p4120_p9 }
  0x99   : > { %4128 = shalt.err (!%p4125_p13)
}
  0x9a   : > { %3820 = dma.hbm_to_vmem [thread:$0]  (!%p4822_p12), %s1035_s20, 128, %s1037_s24, %s4832_s27  }
  0x9b   : > { %s916_s26 = sshll.u32 %s4607_s4, 4  ;;  %s4501_s15 = smov [#allocation13]   ;;  %s917_s26 = int_to_ptr.hbm [resolvable:$true] %s916_s26 }
  0x9c   : > { %s918_s18 = sshll.u32 %s4501_s15, 4  ;;  %s950_s28 = sshll.u32 %s4627_s6, 4  ;;  %s919_s18 = int_to_ptr.vmem [resolvable:$true] %s918_s18  ;;  %s4846_s28 = int_to_ptr.hbm [resolvable:$true] %s950_s28 }
  0x9d   : > { %s4144_s7 = sshra.s32 %s917_s26, 4  ;;  %s4151_s8 = scalar_lea.hbm %s4607_s4, 32  ;;  %s4145_s7 = int_to_ptr.hbm [resolvable:$true] %s4144_s7 }
  0x9e   : > { %s4146_s30 = scalar_lea.hbm %s4145_s7, 32  ;;  %p4152_p7 = scmp.lt.s32.totalorder %s4145_s7, %s4607_s4 }
  0x9f   : > { %p4147_p1 = scmp.ne.s32.totalorder %s4145_s7, %s4146_s30  ;;  %p4153_p9 = scmp.lt.s32.totalorder %s4151_s8, %s4146_s30 }
  0xa1   : > { %p4149_p13 = pnand %p4147_p1, %p4739_p8  ;;  %p4154_p10 = por %p4153_p9, %p4152_p7 }
  0xa3   : > { %p4150_p0 = pneg %p4149_p13 }
  0xa5   : > { %p4155_p11 = pnand %p4154_p10, %p4150_p0 }
  0xa7   : > { %4158 = shalt.err (!%p4155_p11)
}
  0xa8   : > { %s5336_s20 = smov 8   ;;  %s5337_s24 = smov 128  }
  0xa9   : > { %3804 = dma.hbm_to_vmem [thread:$0]  (!%p4729_p5), %s917_s26, 512, %s919_s18, [#allocation12], %s5337_s24, %s5337_s24, %s5336_s20  }
  0xaa   : > { %s973_s15 = sshll.u32 %s4647_s19, 4  ;;  %s4502_s9 = smov [#allocation16]   ;;  %s4858_s15 = int_to_ptr.hbm [resolvable:$true] %s973_s15 }
  0xab   : > { %s952_s22 = sshll.u32 %s4502_s9, 4  ;;  %s4174_s7 = sshra.s32 %s4846_s28, 4  ;;  %s953_s22 = int_to_ptr.vmem [resolvable:$true] %s952_s22  ;;  %s4175_s7 = int_to_ptr.hbm [resolvable:$true] %s4174_s7 }
  0xac   : > { %s4176_s30 = scalar_lea.hbm %s4175_s7, 32  ;;  %s4181_s8 = scalar_lea.hbm %s4627_s6, 32 }
  0xad   : > { %p4177_p1 = scmp.ne.s32.totalorder %s4175_s7, %s4176_s30  ;;  %p4182_p7 = scmp.lt.s32.totalorder %s4175_s7, %s4627_s6 }
  0xae   : > { %p4183_p9 = scmp.lt.s32.totalorder %s4181_s8, %s4176_s30 }
  0xaf   : > { %p4179_p13 = pnand %p4177_p1, %p4739_p8 }
  0xb0   : > { %p4184_p10 = por %p4183_p9, %p4182_p7 }
  0xb1   : > { %p4180_p0 = pneg %p4179_p13 }
  0xb3   : > { %p4185_p11 = pnand %p4184_p10, %p4180_p0 }
  0xb5   : > { %4188 = shalt.err (!%p4185_p11)
}
  0xb6   : > { %3810 = dma.hbm_to_vmem [thread:$0]  (!%p4729_p5), %s4846_s28, 512, %s953_s22, [#allocation15], %s5337_s24, %s5337_s24, %s5336_s20  }
  0xb7   : > { %s4503_s9 = smov [#allocation17]   ;;  %s4204_s26 = sshra.s32 %s4858_s15, 4  ;;  %s4205_s26 = int_to_ptr.hbm [resolvable:$true] %s4204_s26 }
  0xb8   : > { %s975_s18 = sshll.u32 %s4503_s9, 4  ;;  %s4206_s7 = scalar_lea.hbm %s4205_s26, 32  ;;  %s976_s18 = int_to_ptr.vmem [resolvable:$true] %s975_s18 }
  0xb9   : > { %p4207_p1 = scmp.ne.s32.totalorder %s4205_s26, %s4206_s7  ;;  %s4211_s30 = scalar_lea.hbm %s4647_s19, 32 }
  0xba   : > { %p4212_p7 = scmp.lt.s32.totalorder %s4205_s26, %s4647_s19  ;;  %p4213_p9 = scmp.lt.s32.totalorder %s4211_s30, %s4206_s7 }
  0xbb   : > { %p4209_p13 = pnand %p4207_p1, %p4739_p8 }
  0xbc   : > { %p4214_p10 = por %p4213_p9, %p4212_p7 }
  0xbd   : > { %p4210_p0 = pneg %p4209_p13 }
  0xbf   : > { %p4215_p11 = pnand %p4214_p10, %p4210_p0 }
  0xc1   : > { %4218 = shalt.err (!%p4215_p11)
}
  0xc2   : > { %3813 = dma.hbm_to_vmem [thread:$0]  (!%p4729_p5), %s4858_s15, 512, %s976_s18, [#allocation18], %s5337_s24, %s5337_s24, %s5336_s20  }
  0xc3   : > { %s1013_s14 = scalar_lea.hbm %s4522_s5, %s4818_s12  ;;  %s1008_s28 = scalar_lea.vmem [#allocation2], %s4815_s0 }
  0xc4   : > { %s1017_s22 = sshll.u32 %s1008_s28, 4  ;;  %s1015_s8 = sshll.u32 %s1013_s14, 4  ;;  %s1018_s22 = int_to_ptr.vmem [resolvable:$true] %s1017_s22  ;;  %s1016_s8 = int_to_ptr.hbm [resolvable:$true] %s1015_s8 }
  0xc5   : > { %s5338_s9 = sand.u32 1, %s4450_s2   ;;  %s4234_s26 = sshra.s32 %s1016_s8, 4  ;;  %s4235_s26 = int_to_ptr.hbm [resolvable:$true] %s4234_s26 }
  0xc6   : > { %s1005_s23 = scalar_lea.sflag [#allocation3], %s5338_s9  ;;  %s4236_s7 = scalar_lea.hbm %s4235_s26, 8 }
  0xc7   : > { %p4237_p8 = scmp.ne.s32.totalorder %s4235_s26, %s4236_s7  ;;  %s4241_s30 = scalar_lea.hbm %s4522_s5, 16 }
  0xc8   : > { %p4242_p0 = scmp.lt.s32.totalorder %s4235_s26, %s4522_s5  ;;  %p4243_p7 = scmp.lt.s32.totalorder %s4241_s30, %s4236_s7 }
  0xc9   : > { %p4239_p1 = pnand %p4237_p8, %p4118_p2 }
  0xca   : > { %p4244_p5 = por %p4243_p7, %p4242_p0 }
  0xcb   : > { %p4240_p13 = pneg %p4239_p1 }
  0xcd   : > { %p4245_p9 = pnand %p4244_p5, %p4240_p13 }
  0xcf   : > { %4248 = shalt.err (!%p4245_p9)
}
  0xd0   : > { %3817 = dma.hbm_to_vmem [thread:$0]  (!%p4822_p12), %s1016_s8, 128, %s1018_s22, %s1005_s23  }
  0xd1   : > { %s1051_s20 = scalar_lea.hbm %s4532_s13, %s4818_s12  ;;  %s1047_s24 = scalar_lea.vmem [#allocation7], %s4815_s0 }
  0xd2   : > { %s1055_s15 = sshll.u32 %s1047_s24, 4  ;;  %s1053_s18 = sshll.u32 %s1051_s20, 4  ;;  %s1056_s15 = int_to_ptr.vmem [resolvable:$true] %s1055_s15  ;;  %s1054_s18 = int_to_ptr.hbm [resolvable:$true] %s1053_s18 }
  0xd3   : > { %s4264_s14 = sshra.s32 %s1054_s18, 4  ;;  %s4271_s9 = scalar_lea.hbm %s4532_s13, 16  ;;  %s4265_s14 = int_to_ptr.hbm [resolvable:$true] %s4264_s14 }
  0xd4   : > { %s4266_s28 = scalar_lea.hbm %s4265_s14, 8  ;;  %p4272_p1 = scmp.lt.s32.totalorder %s4265_s14, %s4532_s13 }
  0xd5   : > { %p4267_p10 = scmp.ne.s32.totalorder %s4265_s14, %s4266_s28  ;;  %p4273_p13 = scmp.lt.s32.totalorder %s4271_s9, %s4266_s28 }
  0xd7   : > { %p4269_p11 = pnand %p4267_p10, %p4118_p2  ;;  %p4274_p0 = por %p4273_p13, %p4272_p1 }
  0xd9   : > { %p4270_p8 = pneg %p4269_p11 }
  0xdb   : > { %p4275_p7 = pnand %p4274_p0, %p4270_p8 }
  0xdd   : > { %4278 = shalt.err (!%p4275_p7)
}
  0xde   : > { %3823 = dma.hbm_to_vmem [thread:$0]  (!%p4822_p12), %s1054_s18, 128, %s1056_s15, %s4832_s27  }
  0xdf   : > { %s1071_s22 = scalar_lea.hbm %s4537_s17, %s4818_s12  ;;  %s1066_s8 = scalar_lea.vmem [#allocation8], %s4815_s0 }
  0xe0   : > { %s1075_s23 = sshll.u32 %s1066_s8, 4  ;;  %s1073_s26 = sshll.u32 %s1071_s22, 4  ;;  %s1076_s23 = int_to_ptr.vmem [resolvable:$true] %s1075_s23  ;;  %s1074_s26 = int_to_ptr.hbm [resolvable:$true] %s1073_s26 }
  0xe1   : > { %s5339_s7 = sand.u32 1, %s4462_s10   ;;  %s4294_s20 = sshra.s32 %s1074_s26, 4  ;;  %s4295_s20 = int_to_ptr.hbm [resolvable:$true] %s4294_s20 }
  0xe2   : > { %s1063_s30 = scalar_lea.sflag [#allocation9], %s5339_s7  ;;  %s4296_s24 = scalar_lea.hbm %s4295_s20, 8 }
  0xe3   : > { %p4297_p5 = scmp.ne.s32.totalorder %s4295_s20, %s4296_s24  ;;  %s4301_s14 = scalar_lea.hbm %s4537_s17, 16 }
  0xe4   : > { %p4302_p11 = scmp.lt.s32.totalorder %s4295_s20, %s4537_s17  ;;  %p4303_p8 = scmp.lt.s32.totalorder %s4301_s14, %s4296_s24 }
  0xe5   : > { %p4299_p9 = pnand %p4297_p5, %p4118_p2 }
  0xe6   : > { %p4304_p1 = por %p4303_p8, %p4302_p11 }
  0xe7   : > { %p4300_p10 = pneg %p4299_p9 }
  0xe9   : > { %p4305_p13 = pnand %p4304_p1, %p4300_p10 }
  0xeb   : > { %4308 = shalt.err (!%p4305_p13)
}
  0xec   : > { %3826 = dma.hbm_to_vmem [thread:$0]  (!%p4822_p12), %s1074_s26, 128, %s1076_s23, %s1063_s30  }
  0xed   : > { %1090 = sbr.rel (%p4721_p3) target bundleno = 4293 (0x10c5), region = 144  ;;  %s4920_s12 = sand.u32 (!%p4721_p3), 1, %s4446_s1  }
  0xee   : > { %s4923_s27 = sshll.u32 (!%p4721_p3), %s4920_s12, 3  ;;  %s1093_s0 = scalar_lea.sflag (!%p4721_p3), [#allocation3], %s4920_s12 }
  0xef   : > { %s1096_s15 = scalar_lea.vmem (!%p4721_p3), [#allocation2], %s4923_s27 }
  0xf2   : > { %4405 = dma.done.wait (%p4793_p4), %s1093_s0, 128  }
  0xf3   : > { %4407 = vsyncadd (%p4793_p4), %s1093_s0, 4294967168  ;;  %s1102_s16 = sand.u32 1, %s4715_s11   ;;  %s1106_s18 = scalar_lea.vmem [#allocation5], %s4923_s27 }
  0xf4   : > { %s1103_s29 = scalar_lea.sflag [#allocation6], %s1102_s16 }
  0xf5   : > { %4409 = dma.done.wait (%p4793_p4), %s1103_s29, 256  }
  0xf6   : > { %4411 = vsyncadd (%p4793_p4), %s1103_s29, 4294967040  ;;  %s1116_s28 = scalar_lea.vmem [#allocation7], %s4923_s27  ;;  %s1123_s9 = scalar_lea.sflag [#allocation9], %s1102_s16 }
  0xf7   : > { %s1126_s22 = scalar_lea.vmem [#allocation8], %s4923_s27 }
  0xf8   : > { %4413 = dma.done.wait (%p4793_p4), %s1123_s9, 128  }
  0xf9   : > { %4415 = vsyncadd (%p4793_p4), %s1123_s9, 4294967168  ;;  %p5340_p3 = scmp.eq.s32.totalorder %s4715_s11, 0 }
  0xfb   : > { %4417 = dma.done.wait (%p5340_p3), [#allocation9], 512   ;;  %p5341_p12 = pmov %p5340_p3 }
  0xfc   : > { %p5342_p2 = pmov %p5340_p3 }
  0xfd   : > { %4419 = vsyncadd (%p5341_p12), [#allocation9], 4294966784 }
  0xfe   : > { %4421 = dma.done.wait (%p5342_p2), [#allocation12], 1024   ;;  %p5343_p0 = pmov %p5342_p2 }
 0x100   : > { %4423 = vsyncadd (%p5343_p0), [#allocation12], 4294966272  ;;  %p5344_p7 = pmov %p5343_p0 }
 0x101   : > { %p5345_p5 = pmov %p5343_p0 }
 0x102   : > { %4425 = dma.done.wait (%p5344_p7), [#allocation15], 1024  }
 0x103   : > { %4427 = vsyncadd (%p5345_p5), [#allocation15], 4294966272  ;;  %p5346_p4 = pmov %p5343_p0 }
 0x104   : > { %p5347_p9 = pmov %p5343_p0 }
 0x105   : > { %4429 = dma.done.wait (%p5346_p4), [#allocation18], 512  }
 0x106   : > { %4431 = vsyncadd (%p5347_p9), [#allocation18], 4294966784  ;;  %v1276_v0 = vld [vmem:[%s4547_s25 + $0x18] sm:$0xff]  ;;  %v1275_v1 = vld [vmem:[%s4547_s25 + $0x10] sm:$0xff]  ;;  %s5348_s21 = sld [smem:[#allocation33_spill]]  ;;  %vm1296_vm0 = vcmask 261120  }
 0x107   : > { %1312 = vmatpush.msra.mxu1 %v1276_v0  ;;  %v1274_v2 = vld [vmem:[%s4547_s25 + $0x8] sm:$0xff]  ;;  %v1273_v3 = vld [vmem:[%s4547_s25] sm:$0xff]  ;;  %v1281_v5 = vld [vmem:[%s4557_s3 + $0x18] sm:$0xff]  ;;  %s5349_s11 = sld [smem:[#allocation34_spill]]  ;;  %s4504_s8 = smov 112   ;;  %vm1524_vm1 = vcmask 64512  }
 0x108   : > { %v4963_v4 = vld [vmem:[%s1096_s15] sm:$0xff]  ;;  %v1280_v6 = vld [vmem:[%s4557_s3 + $0x10] sm:$0xff]  ;;  %s4505_s23 = smov 120   ;;  %s4506_s26 = smov 104  }
 0x109   : > { %1313 = vmatpush.msra.mxu1 %v1275_v1  ;;  %v1279_v7 = vld [vmem:[%s4557_s3 + $0x8] sm:$0xff]  ;;  %v1278_v8 = vld [vmem:[%s4557_s3] sm:$0xff]  ;;  %v1265_v9 = vld [vmem:[%s1106_s18] sm:$0xff]  ;;  %s5350_s7 = sld [smem:[#allocation35_spill]]  ;;  %s4509_s24 = smov 16  }
 0x10a   : > { %v1267_v28 = vld [vmem:[%s1126_s22] sm:$0xff]  ;;  %s5352_s20 = sld [smem:[#allocation36_spill]]  ;;  %s4510_s14 = smov 24  }
 0x10b   : > { %1314 = vmatpush.msra.mxu1 %v1274_v2  ;;  %v1268_v29 = vsub.f32 1.0, %v1267_v28  ;;  %s4511_s0 = smov 8   ;;  %s5353_s15 = sld [smem:[#allocation38_spill]] }
 0x10c   : > { %v3968_v10 = vld [vmem:[%s5348_s21] ss:$0 sm:$0xff]  ;;  %s5354_s16 = sld [smem:[#allocation43_spill]] }
 0x10d   : > { %1315 = vmatpush.msra.mxu1 %v1273_v3  ;;  %v3969_v13 = vld [vmem:[%s5349_s11] ss:$0 sm:$0xff]  ;;  %v1269_v30 = vmul.f32 -1e+10, %v1268_v29  ;;  %s5355_s29 = sld [smem:[#allocation39_spill]] }
 0x10e   : > { %3717 = vmatmul.msk.f32.vlgmr.msra.gmra.mxu1 %vm1296_vm0, %v4963_v4  ;;  %s5356_s18 = sld [smem:[#allocation40_spill]] }
 0x10f   : > { %1338 = vmatpush.msrb.mxu1 %v1281_v5  ;;  %s5351_s30 = smov %s5350_s7  ;;  %v1286_v35 = vld [vmem:[%s5350_s7 + $0x18] sm:$0xff]  ;;  %s5358_s9 = sld [smem:[#allocation45_spill]] }
 0x110   : > { %v1285_v36 = vld [vmem:[%s5351_s30 + $0x10] sm:$0xff]  ;;  %1361 = vmatpush.msra.mxu2 %v1286_v35  ;;  %v1284_v37 = vld [vmem:[%s5351_s30 + $0x8] sm:$0xff]  ;;  %v1283_v38 = vld [vmem:[%s5351_s30] sm:$0xff]  ;;  %s5359_s22 = sld [smem:[#allocation57_spill]] }
 0x111   : > { %1339 = vmatpush.msrb.mxu1 %v1280_v6  ;;  %s5360_s21 = sld [smem:[#allocation32_spill]] }
 0x112   : > { %1362 = vmatpush.msra.mxu2 %v1285_v36 }
 0x113   : > { %1340 = vmatpush.msrb.mxu1 %v1279_v7 }
 0x114   : > { %1363 = vmatpush.msra.mxu2 %v1284_v37 }
 0x115   : > { %1341 = vmatpush.msrb.mxu1 %v1278_v8  ;;  %v3970_v8 = vld [vmem:[%s5352_s20] ss:$0 sm:$0xff]  ;;  %s5362_s20 = sld [smem:[#allocation50_spill]] }
 0x116   : > { %3718 = vmatmul.msk.f32.vlgmr.msrb.gmra.mxu1 %vm1296_vm0, %v1265_v9  ;;  %1364 = vmatpush.msra.mxu2 %v1283_v38  ;;  %p1261_p10 = scmp.lt.s32.totalorder %s5359_s22, 1 }
 0x117   : > { %3719 = vmatmul.msk.f32.vlgmr.msra.gmra.mxu2 %vm1296_vm0, %v1265_v9 }
 0x118   : > { %s1262_s11 = scalar_select %p1261_p10, %s5359_s22, 1 }
 0x11a   : > { %s1263_s7 = scalar_lea.vmem %s5360_s21, %s1262_s11 }
 0x18b   : > { %v1317_v11 = vpop.f32.mrf.mxu1 }
 0x18c   : > { %v1318_v12 = vadd.f32 %v3968_v10, %v1317_v11 }
 0x18e   : > { %1372 = vrot.lane.b32.xlu2 %v1318_v12, %s4504_s8  ;;  %1370 = vrot.lane.b32.xlu1 %v1318_v12, %s4505_s23 }
 0x193   : > { %v1343_v14 = vpop.f32.mrf.mxu1 }
 0x194   : > { %v1344_v15 = vadd.f32 %v3969_v13, %v1343_v14 }
 0x196   : > { %1377 = vrot.lane.b32.xlu0 %v1344_v15, %s4505_s23  ;;  %1374 = vrot.lane.b32.xlu2 %v1318_v12, %s4506_s26 }
 0x197   : > { %1383 = vrot.lane.b32.xlu1 %v1344_v15, %s4506_s26 }
 0x19a   : > { %v1366_v9 = vpop.f32.mrf.mxu2 }
 0x19b   : > { %v1367_v10 = vadd.f32 %v3970_v8, %v1366_v9  ;;  %v4507_v8 = vmov 1983009808  }
 0x19c   : > { %v2083_v9 = vunpack.c.l.s4 %v4507_v8 }
 0x19e   : > { %1380 = vrot.lane.b32.xlu0 %v1344_v15, %s4504_s8 }
 0x1c0   : > { %1396 = vxpose.xlu0.b32.start.end [1/1] (short) (narrow) %v1344_v15, 8 }
 0x1e8   : > { %v1373_v22 = vpop.permute.xlu2 %1372 }
 0x1f0   : > { %v1375_v23 = vpop.permute.xlu2 %1374 }
 0x200   : > { %v1371_v16 = vpop.permute.xlu1 %1370 }
 0x208   : > { %v1378_v17 = vpop.permute.xlu0 %1377 }
 0x209   : > { %1428 = vxpose.xlu1.b32.start.end [1/1] (short) (narrow) %v1378_v17, 8  ;;  %v1384_v18 = vpop.permute.xlu1 %1383 }
 0x210   : > { %v1381_v19 = vpop.permute.xlu0 %1380 }
 0x211   : > { %v3947_v20 = vpack.i.bf16 %v1384_v18, %v1381_v19 }
 0x213   : > { %3948 = vxpose.xlu2.b32.start.end [1/1] (short) (narrow) %v3947_v20, 8 }
 0x264   : > { %v1412_v21 = vpop.trf.xlu0 }
 0x265   : > { %1542 = vmatpush.msra.mxu3 %v1412_v21 }
 0x266   : > { %3720 = vmatmul.msk.f32.vlgmr.msra.gmra.mxu3 %vm1524_vm1, %v1318_v12 }
 0x2ac   : > { %v3949_v24 = vpop.trf.xlu2 }
 0x2ad   : > { %v3953_v25 = vunpack.i.h.bf16 %v3949_v24  ;;  %v1444_v26 = vpop.trf.xlu1  ;;  %v3950_v27 = vunpack.i.l.bf16 %v3949_v24 }
 0x2ae   : > { %1564 = vmatpush.msrb.mxu3 %v1444_v26 }
 0x2af   : > { %3721 = vmatmul.msk.f32.vlgmr.msrb.gmra.mxu3 %vm1524_vm1, %v1371_v16  ;;  %1586 = vmatpush.msra.mxu0 %v3950_v27 }
 0x2b0   : > { %1608 = vmatpush.msra.mxu1 %v3953_v25  ;;  %3722 = vmatmul.msk.f32.vlgmr.msra.gmra.mxu0 %vm1524_vm1, %v1373_v22 }
 0x2b1   : > { %3723 = vmatmul.msk.f32.vlgmr.msra.gmra.mxu1 %vm1524_vm1, %v1375_v23 }
 0x2e9   : > { %v1544_v31 = vpop.f32.mrf.mxu3 }
 0x2ea   : > { %v1613_v32 = vmul.f32 0.35355338, %v1544_v31 }
 0x2ec   : > { %v1617_v33 = vadd.f32 %v1613_v32, %v1269_v30 }
 0x2ee   : > { %v1621_v34 = vsel %vm1524_vm1, %v1617_v33, -inf }
 0x2ef   : > { %1622 = vmax.xlane.f32.xlu0 %v1621_v34 }
 0x32d   : > { %v1588_v39 = vpop.f32.mrf.mxu0 }
 0x32e   : > { %v1615_v40 = vmul.f32 0.35355338, %v1588_v39  ;;  %v1610_v41 = vpop.f32.mrf.mxu1 }
 0x32f   : > { %v1616_v42 = vmul.f32 0.35355338, %v1610_v41 }
 0x330   : > { %v1619_v43 = vadd.f32 %v1615_v40, %v1269_v30 }
 0x331   : > { %v1620_v44 = vadd.f32 %v1616_v42, %v1269_v30 }
 0x332   : > { %v1566_v45 = vpop.f32.mrf.mxu3  ;;  %v1627_v46 = vsel %vm1524_vm1, %v1619_v43, -inf }
 0x333   : > { %v1614_v47 = vmul.f32 0.35355338, %v1566_v45  ;;  %1628 = vmax.xlane.f32.xlu1 %v1627_v46  ;;  %v1630_v48 = vsel %vm1524_vm1, %v1620_v44, -inf }
 0x334   : > { %1631 = vmax.xlane.f32.xlu0 %v1630_v48 }
 0x335   : > { %v1618_v49 = vadd.f32 %v1614_v47, %v1269_v30 }
 0x337   : > { %v1624_v50 = vsel %vm1524_vm1, %v1618_v49, -inf }
 0x338   : > { %1625 = vmax.xlane.f32.xlu2 %v1624_v50 }
 0x362   : > { %v1623_v51 = vpop.xlane.xlu0 %1622 }
 0x363   : > { %v1633_v52 = vsub.f32 %v1617_v33, %v1623_v51 }
 0x365   : > { %v1637_v53 = vmul.f32 1.442695, %v1633_v52 }
 0x367   : > { %3984 = vpow2.f32 %v1637_v53 }
 0x36d   : > { %v3985_v54 = vpop.eup %3984 }
 0x36e   : > { %v1645_v55 = vsel %vm1524_vm1, %v3985_v54, 0.0 }
 0x36f   : > { %1646 = vadd.xlane.f32.xlu1 %v1645_v55 }
 0x3a6   : > { %v1629_v56 = vpop.xlane.xlu1 %1628 }
 0x3a7   : > { %v1635_v57 = vsub.f32 %v1619_v43, %v1629_v56  ;;  %v1632_v58 = vpop.xlane.xlu0 %1631 }
 0x3a8   : > { %v1636_v59 = vsub.f32 %v1620_v44, %v1632_v58 }
 0x3a9   : > { %v1641_v60 = vmul.f32 1.442695, %v1635_v57 }
 0x3aa   : > { %v1643_v61 = vmul.f32 1.442695, %v1636_v59 }
 0x3ab   : > { %3986 = vpow2.f32 %v1641_v60  ;;  %v1626_v62 = vpop.xlane.xlu2 %1625 }
 0x3ac   : > { %3988 = vpow2.f32 %v1643_v61  ;;  %v1634_v63 = vsub.f32 %v1618_v49, %v1626_v62 }
 0x3ae   : > { %v1639_v0 = vmul.f32 1.442695, %v1634_v63 }
 0x3b0   : > { %3990 = vpow2.f32 %v1639_v0 }
 0x3b1   : > { %v4998_v1 = vpop.eup %3986 }
 0x3b2   : > { %v5000_v2 = vpop.eup %3988  ;;  %v1651_v3 = vsel %vm1524_vm1, %v4998_v1, 0.0 }
 0x3b3   : > { %1652 = vadd.xlane.f32.xlu0 %v1651_v3  ;;  %v1654_v5 = vsel %vm1524_vm1, %v5000_v2, 0.0 }
 0x3b4   : > { %1655 = vadd.xlane.f32.xlu1 %v1654_v5 }
 0x3b6   : > { %v5006_v6 = vpop.eup %3990 }
 0x3b7   : > { %v1648_v7 = vsel %vm1524_vm1, %v5006_v6, 0.0 }
 0x3b8   : > { %1649 = vadd.xlane.f32.xlu2 %v1648_v7 }
 0x3c7   : > { %1390 = vrot.lane.b32.xlu0 %v1367_v10, %s4504_s8 }
 0x3cd   : > { %1393 = vrot.lane.b32.xlu1 %v1367_v10, %s4506_s26 }
 0x3d0   : > { %1387 = vrot.lane.b32.xlu2 %v1367_v10, %s4505_s23 }
 0x3e2   : > { %v1647_v11 = vpop.xlane.xlu1 %1646 }
 0x3e3   : > { %3992 = vrcp.f32 %v1647_v11  ;;  %v1668_v15 = vand.u32 2147483648, %v1647_v11  ;;  %v1666_v17 = vand.u32 2147483647, %v1647_v11  ;;  %vm1662_vm3 = vweird.f32 %v1647_v11 }
 0x3e5   : > { %v1669_v19 = vor.u32 1.1754944e-38, %v1668_v15  ;;  %vm1667_vm5 = vcmp.eq.f32.partialorder %v1666_v17, 8.507059e+37 }
 0x3e9   : > { %v3993_v12 = vpop.eup %3992  ;;  %1717 = vxpose.xlu0.b32.start.end [1/1] (short) (narrow) %v1367_v10, 8 }
 0x3ea   : > { %v1658_v13 = vmul.f32 %v3993_v12, %v1647_v11  ;;  %vm1663_vm2 = vweird.f32 %v3993_v12 }
 0x3eb   : > { %vm1664_vm4 = vmor %vm1662_vm3, %vm1663_vm2 }
 0x3ec   : > { %v1659_v14 = vsub.f32 1.0, %v1658_v13  ;;  %v5025_v13 = vunpack.c.0.s8 %v2083_v9 }
 0x3ee   : > { %v1660_v16 = vmul.f32 %v3993_v12, %v1659_v14 }
 0x3f0   : > { %v1661_v18 = vadd.f32 %v3993_v12, %v1660_v16 }
 0x3f2   : > { %v1665_v20 = vsel %vm1664_vm4, %v3993_v12, %v1661_v18  ;;  %vm2078_vm4 = vcmask 1047556   ;;  %v4508_v18 = vmov 1934713408  }
 0x3f3   : > { %v1670_v21 = vsel %vm1667_vm5, %v1669_v19, %v1665_v20  ;;  %v2107_v19 = vunpack.c.l.s4 %v4508_v18  ;;  %v1290_v18 = vld [vmem:[#allocation10 + $0x10] sm:$0xff]  ;;  %vm2201_vm5 = vcmask 130048  }
 0x3f4   : > { %v1713_v22 = vmul.f32 %v3985_v54, %v1670_v21 }
 0x3f6   : > { %3724 = vmatpush.xpose.msk.msrb.mxu2 %vm1524_vm1, %v1713_v22 }
 0x426   : > { %v1653_v23 = vpop.xlane.xlu0 %1652 }
 0x427   : > { %v1656_v24 = vpop.xlane.xlu1 %1655  ;;  %3994 = vrcp.f32 %v1653_v23  ;;  %v1696_v31 = vand.u32 2147483648, %v1653_v23  ;;  %v1694_v34 = vand.u32 2147483647, %v1653_v23  ;;  %vm1690_vm9 = vweird.f32 %v1653_v23 }
 0x428   : > { %3996 = vrcp.f32 %v1656_v24  ;;  %v1708_v33 = vand.u32 2147483647, %v1656_v24  ;;  %v1710_v36 = vand.u32 2147483648, %v1656_v24  ;;  %vm1704_vm8 = vweird.f32 %v1656_v24 }
 0x429   : > { %v1697_v41 = vor.u32 1.1754944e-38, %v1696_v31  ;;  %vm1695_vm12 = vcmp.eq.f32.partialorder %v1694_v34, 8.507059e+37 }
 0x42a   : > { %vm1709_vm10 = vcmp.eq.f32.partialorder %v1708_v33, 8.507059e+37  ;;  %v1711_v45 = vor.u32 1.1754944e-38, %v1710_v36 }
 0x42b   : > { %v1650_v25 = vpop.xlane.xlu2 %1649 }
 0x42c   : > { %3998 = vrcp.f32 %v1650_v25  ;;  %v1680_v46 = vand.u32 2147483647, %v1650_v25  ;;  %v1682_v47 = vand.u32 2147483648, %v1650_v25  ;;  %vm1676_vm15 = vweird.f32 %v1650_v25 }
 0x42d   : > { %v3995_v26 = vpop.eup %3994 }
 0x42e   : > { %v3997_v27 = vpop.eup %3996  ;;  %v1686_v28 = vmul.f32 %v3995_v26, %v1653_v23  ;;  %vm1691_vm6 = vweird.f32 %v3995_v26  ;;  %v1683_v57 = vor.u32 1.1754944e-38, %v1682_v47  ;;  %vm1681_vm3 = vcmp.eq.f32.partialorder %v1680_v46, 8.507059e+37 }
 0x42f   : > { %v1700_v29 = vmul.f32 %v3997_v27, %v1656_v24  ;;  %vm1705_vm7 = vweird.f32 %v3997_v27  ;;  %vm1692_vm11 = vmor %vm1690_vm9, %vm1691_vm6  ;;  %v5031_v23 = vunpack.c.0.s8 %v2107_v19  ;;  %v1289_v19 = vld [vmem:[#allocation10 + $0x8] sm:$0xff]  ;;  %vm2203_vm6 = vcmask 195584  }
 0x430   : > { %v1687_v30 = vsub.f32 1.0, %v1686_v28  ;;  %vm1706_vm13 = vmor %vm1704_vm8, %vm1705_vm7 }
 0x431   : > { %v1701_v32 = vsub.f32 1.0, %v1700_v29 }
 0x432   : > { %v3999_v35 = vpop.eup %3998  ;;  %v1688_v37 = vmul.f32 %v3995_v26, %v1687_v30 }
 0x433   : > { %v1702_v38 = vmul.f32 %v3997_v27, %v1701_v32  ;;  %v1672_v39 = vmul.f32 %v3999_v35, %v1650_v25  ;;  %v1388_v40 = vpop.permute.xlu2 %1387  ;;  %vm1677_vm14 = vweird.f32 %v3999_v35 }
 0x434   : > { %1749 = vxpose.xlu2.b32.start.end [1/1] (short) (narrow) %v1388_v40, 8  ;;  %v1689_v42 = vadd.f32 %v3995_v26, %v1688_v37  ;;  %vm1678_vm2 = vmor %vm1676_vm15, %vm1677_vm14 }
 0x435   : > { %v1703_v43 = vadd.f32 %v3997_v27, %v1702_v38  ;;  %v1673_v44 = vsub.f32 1.0, %v1672_v39 }
 0x436   : > { %v1693_v48 = vsel %vm1692_vm11, %v3995_v26, %v1689_v42 }
 0x437   : > { %v1707_v49 = vsel %vm1706_vm13, %v3997_v27, %v1703_v43  ;;  %v1674_v50 = vmul.f32 %v3999_v35, %v1673_v44  ;;  %v1698_v51 = vsel %vm1695_vm12, %v1697_v41, %v1693_v48 }
 0x438   : > { %v1712_v52 = vsel %vm1709_vm10, %v1711_v45, %v1707_v49  ;;  %v1715_v53 = vmul.f32 %v4998_v1, %v1698_v51 }
 0x439   : > { %v1675_v54 = vadd.f32 %v3999_v35, %v1674_v50  ;;  %v1391_v55 = vpop.permute.xlu0 %1390  ;;  %v1716_v56 = vmul.f32 %v5000_v2, %v1712_v52 }
 0x43a   : > { %3728 = vmatpush.xpose.msk.msrb.mxu0 %vm1524_vm1, %v1715_v53  ;;  %1781 = vxpose.xlu1.b32.start.end [1/1] (short) (narrow) %v1391_v55, 8 }
 0x43b   : > { %v1679_v58 = vsel %vm1678_vm2, %v3999_v35, %v1675_v54  ;;  %3730 = vmatpush.xpose.msk.msrb.mxu1 %vm1524_vm1, %v1716_v56 }
 0x43c   : > { %v1684_v59 = vsel %vm1681_vm3, %v1683_v57, %v1679_v58 }
 0x43d   : > { %v1714_v60 = vmul.f32 %v5006_v6, %v1684_v59 }
 0x43f   : > { %v1394_v61 = vpop.permute.xlu1 %1393  ;;  %3726 = vmatpush.xpose.msk.msra.mxu3 %vm1524_vm1, %v1714_v60 }
 0x440   : > { %1813 = vxpose.xlu0.b32.start.end [1/1] (short) (narrow) %v1394_v61, 8 }
 0x48d   : > { %v1733_v62 = vpop.trf.xlu0 }
 0x48e   : > { %3725 = vmatmul.msk.f32.vlgmr.msrb.gmra.mxu2 %vm1524_vm1, %v1733_v62 }
 0x4cd   : > { %v1765_v63 = vpop.trf.xlu2 }
 0x4ce   : > { %3727 = vmatmul.msk.f32.vlgmr.msra.gmra.mxu3 %vm1524_vm1, %v1765_v63 }
 0x4de   : > { %v1797_v0 = vpop.trf.xlu1 }
 0x4df   : > { %3729 = vmatmul.msk.f32.vlgmr.msrb.gmra.mxu0 %vm1524_vm1, %v1797_v0 }
 0x4e4   : > { %v1829_v1 = vpop.trf.xlu0 }
 0x4e5   : > { %3731 = vmatmul.msk.f32.vlgmr.msrb.gmra.mxu1 %vm1524_vm1, %v1829_v1 }
 0x511   : > { %v1868_v2 = vpop.f32.mrf.mxu2 }
 0x512   : > { %1949 = vxpose.xlu0.b32.start.end [1/1] (short) (narrow) %v1868_v2, 8 }
 0x551   : > { %v1894_v3 = vpop.f32.mrf.mxu3 }
 0x552   : > { %1981 = vxpose.xlu0.b32.start.end [1/1] (short) (narrow) %v1894_v3, 8 }
 0x55c   : > { %v1920_v5 = vpop.f32.mrf.mxu0 }
 0x55d   : > { %2013 = vxpose.xlu2.b32.start.end [1/1] (short) (narrow) %v1920_v5, 8 }
 0x562   : > { %v1946_v6 = vpop.f32.mrf.mxu1 }
 0x565   : > { %2045 = vxpose.xlu2.b32.start.end [1/1] (short) (narrow) %v1946_v6, 8 }
 0x5b6   : > { %v1965_v7 = vpop.trf.xlu0 }
 0x5b7   : > { %v2080_v10 = vrot.slane %v1965_v7, 4 }
 0x5f6   : > { %v2029_v11 = vpop.trf.xlu2  ;;  %v1997_v14 = vpop.trf.xlu0 }
 0x5f7   : > { %v2077_v12 = vrot.slane %v2029_v11, 4  ;;  %v2081_v15 = vsel %vm2078_vm4, %v2029_v11, %v2080_v10  ;;  %v2092_v17 = vrot.slane %v1997_v14, 4 }
 0x5f8   : > { %v2089_v20 = vperm.slane %v2081_v15, %v5025_v13 }
 0x5f9   : > { %v2079_v16 = vsel %vm2078_vm4, %v2077_v12, %v1965_v7 }
 0x5fa   : > { %v2085_v21 = vperm.slane %v2079_v16, %v5025_v13  ;;  %v2116_v26 = vrot.slane %v2089_v20, 4 }
 0x5fc   : > { %v2104_v29 = vrot.slane %v2085_v21, 4 }
 0x5fe   : > { %v2061_v22 = vpop.trf.xlu2 }
 0x5ff   : > { %v2090_v24 = vrot.slane %v2061_v22, 4  ;;  %v2093_v25 = vsel %vm2078_vm4, %v2061_v22, %v2092_v17  ;;  %v1291_v17 = vld [vmem:[#allocation10 + $0x18] sm:$0xff] }
 0x600   : > { %v2101_v27 = vperm.slane %v2093_v25, %v5025_v13  ;;  %2223 = vmatpush.msra.mxu2 %v1291_v17 }
 0x601   : > { %v2091_v28 = vsel %vm2078_vm4, %v2090_v24, %v1997_v14 }
 0x602   : > { %v2097_v30 = vperm.slane %v2091_v28, %v5025_v13  ;;  %v2114_v31 = vrot.slane %v2101_v27, 4  ;;  %v2117_v32 = vsel %vm2078_vm4, %v2101_v27, %v2116_v26  ;;  %2224 = vmatpush.msra.mxu2 %v1290_v18 }
 0x603   : > { %v2125_v33 = vperm.slane %v2117_v32, %v5031_v23  ;;  %v1266_v32 = vld [vmem:[%s1116_s28] sm:$0xff]  ;;  %s5357_s28 = sld [smem:[#allocation42_spill]] }
 0x604   : > { %v2102_v34 = vrot.slane %v2097_v30, 4  ;;  %v2105_v35 = vsel %vm2078_vm4, %v2097_v30, %v2104_v29  ;;  %v2115_v36 = vsel %vm2078_vm4, %v2114_v31, %v2089_v20  ;;  %2225 = vmatpush.msra.mxu2 %v1289_v19  ;;  %v1288_v20 = vld [vmem:[#allocation10] sm:$0xff]  ;;  %v2278_v29 = vld [vmem:[#allocation13 + $0x10] sm:$0xff]  ;;  %v2277_v30 = vld [vmem:[#allocation13 + $0x8] sm:$0xff] }
 0x605   : > { %v2113_v37 = vperm.slane %v2105_v35, %v5031_v23  ;;  %v2121_v38 = vperm.slane %v2115_v36, %v5031_v23  ;;  %v2132_v39 = vrot.slane %v2125_v33, 4  ;;  %v2276_v31 = vld [vmem:[#allocation13] sm:$0xff] }
 0x606   : > { %v2103_v40 = vsel %vm2078_vm4, %v2102_v34, %v2085_v21  ;;  %2226 = vmatpush.msra.mxu2 %v1288_v20  ;;  %v2279_v21 = vld [vmem:[#allocation13 + $0x18] sm:$0xff]  ;;  %v3971_v33 = vld [vmem:[%s5353_s15] ss:$0 sm:$0xff]  ;;  %s5365_s15 = sld [smem:[#allocation49_spill]] }
 0x607   : > { %v2109_v41 = vperm.slane %v2103_v40, %v5031_v23  ;;  %v2128_v42 = vrot.slane %v2113_v37, 4  ;;  %v2130_v43 = vrot.slane %v2121_v38, 4  ;;  %v2133_v44 = vsel %vm2078_vm4, 0.0, %v2132_v39  ;;  %2335 = vmatpush.msra.mxu0 %v2279_v21 }
 0x608   : > { %v2145_v45 = vsel %vm2078_vm4, %v2132_v39, %v2121_v38  ;;  %v2150_v46 = vrot.slane %v2133_v44, 4  ;;  %v4512_v38 = vmov 32.0   ;;  %v3972_v39 = vld [vmem:[%s5354_s16] ss:$0 sm:$0xff]  ;;  %s5366_s16 = sld [smem:[#allocation51_spill]] }
 0x609   : > { %v2126_v47 = vrot.slane %v2109_v41, 4  ;;  %v2129_v48 = vsel %vm2078_vm4, 0.0, %v2128_v42  ;;  %v2131_v49 = vsel %vm2078_vm4, 0.0, %v2130_v43  ;;  %v2149_v50 = vperm.slane %v2145_v45, %v5025_v13  ;;  %2336 = vmatpush.msra.mxu0 %v2278_v29  ;;  %v3975_v18 = vld [vmem:[%s5357_s28] ss:$0 sm:$0xff]  ;;  %s3758_s28 = sshll.u32 %s5359_s22, 5 }
 0x60a   : > { %v2139_v51 = vrot.slane %v2129_v48, 4  ;;  %v2134_v52 = vsel %vm2078_vm4, %v2128_v42, %v2109_v41  ;;  %v2151_v53 = vsel %vm2078_vm4, %v2150_v46, %v2131_v49  ;;  %4000 = vrcp.f32 %v4512_v38  ;;  %v1270_v29 = vld [vmem:[%s1263_s7] sm:$0x1]  ;;  %s3372_s7 = scalar_lea.sflag [#allocation21], %s4920_s12 }
 0x60b   : > { %v2127_v54 = vsel %vm2078_vm4, 0.0, %v2126_v47  ;;  %v2138_v55 = vperm.slane %v2134_v52, %v5025_v13  ;;  %v2155_v56 = vperm.slane %v2151_v53, %v5025_v13  ;;  %v2170_v57 = vrot.slane %v2149_v50, 4  ;;  %2337 = vmatpush.msra.mxu0 %v2277_v30 }
 0x60c   : > { %v2140_v58 = vsel %vm2078_vm4, %v2139_v51, %v2127_v54  ;;  %v2274_v54 = vld [vmem:[#allocation11 + $0x18] sm:$0xff]  ;;  %v1271_v30 = vsub.f32 1.0, %v1270_v29 }
 0x60d   : > { %v2144_v59 = vperm.slane %v2140_v58, %v5025_v13  ;;  %v2158_v60 = vrot.slane %v2138_v55, 4  ;;  %v2171_v61 = vsel %vm2078_vm4, %v2155_v56, %v2170_v57  ;;  %v2168_v62 = vrot.slane %v2155_v56, 4  ;;  %2338 = vmatpush.msra.mxu0 %v2276_v31  ;;  %2309 = vmatpush.msrb.mxu3 %v2274_v54  ;;  %v2272_v56 = vld [vmem:[#allocation11 + $0x8] sm:$0xff]  ;;  %v2271_v57 = vld [vmem:[#allocation11] sm:$0xff]  ;;  %v2284_v58 = vld [vmem:[#allocation14 + $0x18] sm:$0xff] }
 0x60e   : > { %v2179_v63 = vperm.slane %v2171_v61, %v5031_v23  ;;  %3734 = vmatmul.msk.f32.vlgmr.msra.gmra.mxu0 %vm1296_vm0, %v1266_v32  ;;  %2358 = vmatpush.msra.mxu1 %v2284_v58  ;;  %v1272_v31 = vmul.f32 -1e+10, %v1271_v30 }
 0x60f   : > { %v2159_v0 = vsel %vm2078_vm4, %v2144_v59, %v2158_v60  ;;  %v2156_v1 = vrot.slane %v2144_v59, 4  ;;  %v2169_v2 = vsel %vm2078_vm4, %v2168_v62, %v2149_v50  ;;  %v2283_v59 = vld [vmem:[#allocation14 + $0x10] sm:$0xff]  ;;  %v2282_v60 = vld [vmem:[#allocation14 + $0x8] sm:$0xff] }
 0x610   : > { %v2167_v3 = vperm.slane %v2159_v0, %v5031_v23  ;;  %v2184_v5 = vrot.slane %v2179_v63, 4  ;;  %v2175_v6 = vperm.slane %v2169_v2, %v5031_v23  ;;  %v4001_v41 = vpop.eup %4000  ;;  %2359 = vmatpush.msra.mxu1 %v2283_v59 }
 0x611   : > { %v2157_v7 = vsel %vm2078_vm4, %v2156_v1, %v2138_v55  ;;  %v2238_v43 = vmul.f32 32.0, %v4001_v41  ;;  %vm2242_vm7 = vweird.f32 %v4001_v41  ;;  %v2273_v55 = vld [vmem:[#allocation11 + $0x10] sm:$0xff] }
 0x612   : > { %v2185_v8 = vsel %vm2078_vm4, %v2184_v5, %v2167_v3  ;;  %v2186_v9 = vrot.slane %v2167_v3, 4  ;;  %v2163_v10 = vperm.slane %v2157_v7, %v5031_v23  ;;  %v2180_v11 = vrot.slane %v2175_v6, 4  ;;  %2310 = vmatpush.msrb.mxu3 %v2273_v55  ;;  %2360 = vmatpush.msra.mxu1 %v2282_v60 }
 0x613   : > { %2193 = vrot.lane.b32.xlu0 %v2185_v8, %s4509_s24  ;;  %v2239_v44 = vsub.f32 1.0, %v2238_v43  ;;  %v3973_v8 = vld [vmem:[%s5355_s29] ss:$0 sm:$0xff]  ;;  %s5367_s29 = sld [smem:[#allocation55_spill]] }
 0x614   : > { %v2187_v12 = vsel %vm2078_vm4, %v2179_v63, %v2186_v9  ;;  %v2182_v14 = vrot.slane %v2163_v10, 4  ;;  %v2181_v15 = vsel %vm2078_vm4, %v2180_v11, %v2163_v10  ;;  %2311 = vmatpush.msrb.mxu3 %v2272_v56  ;;  %v2281_v63 = vld [vmem:[#allocation14] sm:$0xff] }
 0x615   : > { %2197 = vrot.lane.b32.xlu1 %v2187_v12, %s4510_s14  ;;  %v2240_v45 = vmul.f32 %v4001_v41, %v2239_v44  ;;  %2361 = vmatpush.msra.mxu1 %v2281_v63  ;;  %v3974_v11 = vld [vmem:[%s5356_s18] ss:$0 sm:$0xff] }
 0x616   : > { %v2183_v16 = vsel %vm2078_vm4, %v2175_v6, %v2182_v14  ;;  %2312 = vmatpush.msrb.mxu3 %v2271_v57  ;;  %3735 = vmatmul.msk.f32.vlgmr.msra.gmra.mxu1 %vm1296_vm0, %v1266_v32 }
 0x617   : > { %2189 = vrot.lane.b32.xlu2 %v2183_v16, %s4511_s0  ;;  %v2241_v46 = vadd.f32 %v4001_v41, %v2240_v45 }
 0x671   : > { %v2190_v22 = vpop.permute.xlu2 %2189 }
 0x672   : > { %v2200_v24 = vsel %vm1524_vm1, %v2181_v15, %v2190_v22 }
 0x685   : > { %v2194_v25 = vpop.permute.xlu0 %2193 }
 0x686   : > { %v2202_v26 = vsel %vm2201_vm5, %v2200_v24, %v2194_v25  ;;  %v3976_v25 = vld [vmem:[%s5358_s9] ss:$0 sm:$0xff]  ;;  %s3399_s9 = scalar_lea.hbm %s5367_s29, %s3758_s28 }
 0x687   : > { %v2198_v27 = vpop.permute.xlu1 %2197  ;;  %s3402_s11 = sshll.u32 %s3399_s9, 4  ;;  %s3403_s11 = int_to_ptr.hbm [resolvable:$true] %s3402_s11 }
 0x688   : > { %v2204_v28 = vsel %vm2203_vm6, %v2202_v26, %v2198_v27 }
 0x689   : > { %3732 = vmatmul.msk.f32.vlgmr.msra.gmra.mxu2 %vm1296_vm0, %v2204_v28 }
 0x68b   : > { %v2340_v40 = vpop.f32.mrf.mxu0 }
 0x68c   : > { %v2341_v42 = vadd.f32 %v3972_v39, %v2340_v40 }
 0x68e   : > { %2374 = vrot.lane.b32.xlu0 %v2341_v42, %s4505_s23 }
 0x693   : > { %v2363_v26 = vpop.f32.mrf.mxu1 }
 0x694   : > { %v2364_v27 = vadd.f32 %v3976_v25, %v2363_v26 }
 0x696   : > { %2377 = vrot.lane.b32.xlu0 %v2341_v42, %s4504_s8 }
 0x69e   : > { %2380 = vrot.lane.b32.xlu0 %v2341_v42, %s4506_s26 }
 0x700   : > { %v2375_v52 = vpop.permute.xlu0 %2374 }
 0x701   : > { %v3954_v53 = vpack.i.bf16 %v2375_v52, %v2341_v42 }
 0x708   : > { %v2378_v21 = vpop.permute.xlu0 %2377 }
 0x70c   : > { %v2228_v34 = vpop.f32.mrf.mxu2 }
 0x70d   : > { %v2229_v35 = vadd.f32 %v3971_v33, %v2228_v34  ;;  %v2614_v34 = vperm.slane %v1272_v31, 0 }
 0x70f   : > { %v2231_v36 = vadd.f32 %v2229_v35, %v4963_v4  ;;  %v5086_v4 = vsel %vm2242_vm7, %v4001_v41, %v2241_v46 }
 0x710   : > { %v2381_v22 = vpop.permute.xlu0 %2380 }
 0x711   : > { %v2234_v37 = vsel %vm1296_vm0, %v2231_v36, 0.0  ;;  %v3961_v24 = vpack.i.bf16 %v2381_v22, %v2378_v21 }
 0x712   : > { %2235 = vadd.xlane.f32.xlu1 %v2234_v37 }
 0x785   : > { %v2236_v47 = vpop.xlane.xlu1 %2235 }
 0x786   : > { %v2244_v48 = vmul.f32 %v5086_v4, %v2236_v47 }
 0x788   : > { %v2245_v49 = vsub.f32 %v2231_v36, %v2244_v48 }
 0x78a   : > { %v2246_v50 = vmul.f32 %v2245_v49, %v2245_v49 }
 0x78c   : > { %v2247_v51 = vsel %vm1296_vm0, %v2246_v50, 0.0 }
 0x78d   : > { %2248 = vadd.xlane.f32.xlu2 %v2247_v51 }
 0x7b6   : > { %3955 = vxpose.xlu2.b32.start.end [1/1] (short) (narrow) %v3954_v53, 8 }
 0x800   : > { %v2249_v61 = vpop.xlane.xlu2 %2248 }
 0x801   : > { %v2250_v62 = vmul.f32 %v2249_v61, %v5086_v4 }
 0x803   : > { %v2251_v0 = vadd.f32 1e-05, %v2250_v62 }
 0x805   : > { %4002 = vrsqrt.f32 %v2251_v0  ;;  %vm2258_vm9 = vweird.f32 %v2251_v0 }
 0x80b   : > { %v4003_v1 = vpop.eup %4002 }
 0x80c   : > { %v2253_v2 = vmul.f32 %v4003_v1, %v2251_v0  ;;  %vm2259_vm8 = vweird.f32 %v4003_v1 }
 0x80d   : > { %vm2260_vm10 = vmor %vm2258_vm9, %vm2259_vm8 }
 0x80e   : > { %v2254_v3 = vmul.f32 %v4003_v1, %v2253_v2 }
 0x810   : > { %v2255_v5 = vmul.f32 0.5, %v2254_v3 }
 0x812   : > { %v2256_v6 = vsub.f32 1.5, %v2255_v5 }
 0x814   : > { %v2257_v7 = vmul.f32 %v4003_v1, %v2256_v6 }
 0x816   : > { %v2261_v9 = vsel %vm2260_vm10, %v4003_v1, %v2257_v7 }
 0x817   : > { %v2262_v10 = vmul.f32 %v2261_v9, %v2245_v49 }
 0x819   : > { %v2266_v12 = vmul.f32 %v3973_v8, %v2262_v10 }
 0x81b   : > { %v5094_v14 = vadd.f32 %v3974_v11, %v2266_v12 }
 0x81d   : > { %3733 = vmatmul.msk.f32.vlgmr.msrb.gmra.mxu3 %vm1296_vm0, %v5094_v14 }
 0x84f   : > { %v3956_v15 = vpop.trf.xlu2 }
 0x850   : > { %v3960_v16 = vunpack.i.h.bf16 %v3956_v15  ;;  %v3957_v17 = vunpack.i.l.bf16 %v3956_v15 }
 0x852   : > { %2538 = vmatpush.msrb.mxu2 %v3957_v17  ;;  %2560 = vmatpush.msra.mxu3 %v3960_v16 }
 0x8a0   : > { %v2314_v19 = vpop.f32.mrf.mxu3 }
 0x8a1   : > { %v2315_v20 = vadd.f32 %v3975_v18, %v2314_v19 }
 0x8a3   : > { %2369 = vrot.lane.b32.xlu1 %v2315_v20, %s4504_s8  ;;  %2367 = vrot.lane.b32.xlu0 %v2315_v20, %s4505_s23 }
 0x8a4   : > { %3736 = vmatmul.msk.f32.vlgmr.msrb.gmra.mxu2 %vm1524_vm1, %v2315_v20 }
 0x8ab   : > { %2371 = vrot.lane.b32.xlu0 %v2315_v20, %s4506_s26 }
 0x8cd   : > { %3962 = vxpose.xlu0.b32.start.end [1/1] (short) (narrow) %v3961_v24, 8 }
 0x8d8   : > { %2716 = vxpose.xlu1.b32.start.end [1/1] (short) (narrow) %v2364_v27, 8 }
 0x915   : > { %v2368_v28 = vpop.permute.xlu0 %2367  ;;  %v2370_v41 = vpop.permute.xlu1 %2369 }
 0x916   : > { %3737 = vmatmul.msk.f32.vlgmr.msra.gmra.mxu3 %vm1524_vm1, %v2368_v28 }
 0x91d   : > { %v2372_v37 = vpop.permute.xlu0 %2371 }
 0x927   : > { %v2540_v32 = vpop.f32.mrf.mxu2 }
 0x928   : > { %v2609_v33 = vmul.f32 0.35355338, %v2540_v32 }
 0x92a   : > { %v2616_v35 = vadd.f32 %v2614_v34, %v2609_v33 }
 0x92c   : > { %v2620_v36 = vsel %vm1524_vm1, %v2616_v35, -inf }
 0x938   : > { %2621 = vmax.xlane.f32.xlu1 %v2620_v36 }
 0x971   : > { %v3963_v38 = vpop.trf.xlu0 }
 0x972   : > { %v3967_v39 = vunpack.i.h.bf16 %v3963_v38  ;;  %v3964_v40 = vunpack.i.l.bf16 %v3963_v38 }
 0x974   : > { %2582 = vmatpush.msrb.mxu0 %v3964_v40  ;;  %2604 = vmatpush.msrb.mxu1 %v3967_v39 }
 0x975   : > { %3738 = vmatmul.msk.f32.vlgmr.msrb.gmra.mxu0 %vm1524_vm1, %v2370_v41  ;;  %3739 = vmatmul.msk.f32.vlgmr.msrb.gmra.mxu1 %vm1524_vm1, %v2372_v37 }
 0x97c   : > { %v2732_v54 = vpop.trf.xlu1 }
 0x999   : > { %v2562_v42 = vpop.f32.mrf.mxu3 }
 0x99a   : > { %v2610_v43 = vmul.f32 0.35355338, %v2562_v42 }
 0x99c   : > { %v2617_v44 = vadd.f32 %v2614_v34, %v2610_v43 }
 0x99e   : > { %v2623_v45 = vsel %vm1524_vm1, %v2617_v44, -inf }
 0x99f   : > { %2624 = vmax.xlane.f32.xlu2 %v2623_v45 }
 0x9ab   : > { %v2622_v55 = vpop.xlane.xlu1 %2621 }
 0x9ac   : > { %v2632_v56 = vsub.f32 %v2616_v35, %v2622_v55 }
 0x9ae   : > { %v2636_v57 = vmul.f32 1.442695, %v2632_v56 }
 0x9b0   : > { %4004 = vpow2.f32 %v2636_v57 }
 0x9b6   : > { %v4005_v58 = vpop.eup %4004 }
 0x9b7   : > { %v2644_v59 = vsel %vm1524_vm1, %v4005_v58, 0.0 }
 0x9f2   : > { %v2584_v46 = vpop.f32.mrf.mxu0  ;;  %v2606_v47 = vpop.f32.mrf.mxu1 }
 0x9f3   : > { %v2611_v48 = vmul.f32 0.35355338, %v2584_v46  ;;  %v2612_v49 = vmul.f32 0.35355338, %v2606_v47 }
 0x9f5   : > { %v2618_v50 = vadd.f32 %v2614_v34, %v2611_v48  ;;  %v2619_v51 = vadd.f32 %v2614_v34, %v2612_v49 }
 0x9f7   : > { %v2626_v52 = vsel %vm1524_vm1, %v2618_v50, -inf  ;;  %v2629_v53 = vsel %vm1524_vm1, %v2619_v51, -inf }
 0x9f8   : > { %2627 = vmax.xlane.f32.xlu0 %v2626_v52  ;;  %2630 = vmax.xlane.f32.xlu1 %v2629_v53 }
 0xa11   : > { %2384 = vrot.lane.b32.xlu1 %v2364_v27, %s4505_s23 }
 0xa12   : > { %v2625_v2 = vpop.xlane.xlu2 %2624 }
 0xa13   : > { %v2633_v5 = vsub.f32 %v2617_v44, %v2625_v2 }
 0xa15   : > { %v2638_v7 = vmul.f32 1.442695, %v2633_v5 }
 0xa19   : > { %2387 = vrot.lane.b32.xlu1 %v2364_v27, %s4504_s8  ;;  %s3716_s8 = sshll.u32 %s4920_s12, 5 }
 0xa1a   : > { %s5132_s23 = scalar_lea.vmem [#allocation20], %s3716_s8  ;;  %s4338_s8 = sshra.s32 %s3403_s11, 4  ;;  %s4339_s8 = int_to_ptr.hbm [resolvable:$true] %s4338_s8 }
 0xa1b   : > { %s3400_s21 = sshll.u32 %s5132_s23, 4  ;;  %p4345_p13 = scmp.lt.s32.totalorder %s4339_s8, %s5367_s29  ;;  %s3401_s21 = int_to_ptr.vmem [resolvable:$true] %s3400_s21 }
 0xa21   : > { %2390 = vrot.lane.b32.xlu1 %v2364_v27, %s4506_s26  ;;  %s5361_s26 = sld [smem:[#allocation46_spill]] }
 0xa4b   : > { %2645 = vadd.xlane.f32.xlu1 %v2644_v59 }
 0xa6b   : > { %v2628_v60 = vpop.xlane.xlu0 %2627  ;;  %v2631_v61 = vpop.xlane.xlu1 %2630 }
 0xa6c   : > { %v2634_v62 = vsub.f32 %v2618_v50, %v2628_v60  ;;  %v2635_v0 = vsub.f32 %v2619_v51, %v2631_v61 }
 0xa6e   : > { %v2640_v63 = vmul.f32 1.442695, %v2634_v62  ;;  %v2642_v1 = vmul.f32 1.442695, %v2635_v0 }
 0xa70   : > { %4006 = vpow2.f32 %v2640_v63 }
 0xa71   : > { %4008 = vpow2.f32 %v2642_v1 }
 0xa72   : > { %4010 = vpow2.f32 %v2638_v7 }
 0xa76   : > { %v5118_v3 = vpop.eup %4006 }
 0xa77   : > { %v2650_v6 = vsel %vm1524_vm1, %v5118_v3, 0.0  ;;  %v5122_v8 = vpop.eup %4008 }
 0xa78   : > { %2651 = vadd.xlane.f32.xlu1 %v2650_v6  ;;  %v2653_v9 = vsel %vm1524_vm1, %v5122_v8, 0.0  ;;  %v5126_v11 = vpop.eup %4010 }
 0xa79   : > { %v2647_v12 = vsel %vm1524_vm1, %v5126_v11, 0.0 }
 0xa80   : > { %2654 = vadd.xlane.f32.xlu1 %v2653_v9 }
 0xa83   : > { %v2385_v10 = vpop.permute.xlu1 %2384 }
 0xa84   : > { %2748 = vxpose.xlu2.b32.start.end [1/1] (short) (narrow) %v2385_v10, 8 }
 0xa88   : > { %2648 = vadd.xlane.f32.xlu1 %v2647_v12 }
 0xa8b   : > { %v2388_v15 = vpop.permute.xlu1 %2387 }
 0xa8c   : > { %2780 = vxpose.xlu0.b32.start.end [1/1] (short) (narrow) %v2388_v15, 8 }
 0xa93   : > { %v2391_v16 = vpop.permute.xlu1 %2390 }
 0xabe   : > { %v2646_v17 = vpop.xlane.xlu1 %2645 }
 0xabf   : > { %4012 = vrcp.f32 %v2646_v17  ;;  %v2667_v21 = vand.u32 2147483648, %v2646_v17  ;;  %v2665_v24 = vand.u32 2147483647, %v2646_v17  ;;  %vm2661_vm12 = vweird.f32 %v2646_v17 }
 0xac1   : > { %v2668_v26 = vor.u32 1.1754944e-38, %v2667_v21  ;;  %vm2666_vm14 = vcmp.eq.f32.partialorder %v2665_v24, 8.507059e+37 }
 0xac2   : > { %2812 = vxpose.xlu1.b32.start.end [1/1] (short) (narrow) %v2391_v16, 8 }
 0xac5   : > { %v4013_v18 = vpop.eup %4012 }
 0xac6   : > { %v2657_v19 = vmul.f32 %v4013_v18, %v2646_v17  ;;  %vm2662_vm11 = vweird.f32 %v4013_v18 }
 0xac7   : > { %vm2663_vm13 = vmor %vm2661_vm12, %vm2662_vm11 }
 0xac8   : > { %v2658_v20 = vsub.f32 1.0, %v2657_v19 }
 0xaca   : > { %v2659_v22 = vmul.f32 %v4013_v18, %v2658_v20 }
 0xacc   : > { %v2660_v25 = vadd.f32 %v4013_v18, %v2659_v22 }
 0xace   : > { %v2664_v27 = vsel %vm2663_vm13, %v4013_v18, %v2660_v25 }
 0xacf   : > { %v2669_v28 = vsel %vm2666_vm14, %v2668_v26, %v2664_v27 }
 0xad0   : > { %v2712_v29 = vmul.f32 %v4005_v58, %v2669_v28 }
 0xad2   : > { %3740 = vmatpush.xpose.msk.msra.mxu2 %vm1524_vm1, %v2712_v29  ;;  %3260 = vst.msk [vmem:[%s5132_s23] sm:$0xff] %vm1524_vm1, %v2712_v29 }
 0xad5   : > { %3741 = vmatmul.msk.f32.vlgmr.msra.gmra.mxu2 %vm1524_vm1, %v2732_v54 }
 0xaeb   : > { %v2652_v30 = vpop.xlane.xlu1 %2651 }
 0xaec   : > { %4014 = vrcp.f32 %v2652_v30  ;;  %v2695_v35 = vand.u32 2147483648, %v2652_v30  ;;  %v2693_v37 = vand.u32 2147483647, %v2652_v30  ;;  %vm2689_vm2 = vweird.f32 %v2652_v30 }
 0xaee   : > { %v2696_v40 = vor.u32 1.1754944e-38, %v2695_v35  ;;  %vm2694_vm7 = vcmp.eq.f32.partialorder %v2693_v37, 8.507059e+37 }
 0xaf2   : > { %v4015_v31 = vpop.eup %4014 }
 0xaf3   : > { %v2685_v32 = vmul.f32 %v4015_v31, %v2652_v30  ;;  %v2655_v33 = vpop.xlane.xlu1 %2654  ;;  %vm2690_vm15 = vweird.f32 %v4015_v31 }
 0xaf4   : > { %4016 = vrcp.f32 %v2655_v33  ;;  %vm2691_vm3 = vmor %vm2689_vm2, %vm2690_vm15  ;;  %v2709_v47 = vand.u32 2147483648, %v2655_v33  ;;  %v2707_v49 = vand.u32 2147483647, %v2655_v33  ;;  %vm2703_vm9 = vweird.f32 %v2655_v33 }
 0xaf5   : > { %v2686_v34 = vsub.f32 1.0, %v2685_v32 }
 0xaf6   : > { %v2710_v52 = vor.u32 1.1754944e-38, %v2709_v47  ;;  %vm2708_vm11 = vcmp.eq.f32.partialorder %v2707_v49, 8.507059e+37 }
 0xaf7   : > { %v2687_v36 = vmul.f32 %v4015_v31, %v2686_v34 }
 0xaf9   : > { %v2688_v38 = vadd.f32 %v4015_v31, %v2687_v36 }
 0xafa   : > { %v4017_v39 = vpop.eup %4016 }
 0xafb   : > { %v2692_v41 = vsel %vm2691_vm3, %v4015_v31, %v2688_v38  ;;  %v2699_v42 = vmul.f32 %v4017_v39, %v2655_v33  ;;  %v2649_v43 = vpop.xlane.xlu1 %2648  ;;  %vm2704_vm8 = vweird.f32 %v4017_v39 }
 0xafc   : > { %v2697_v44 = vsel %vm2694_vm7, %v2696_v40, %v2692_v41  ;;  %4018 = vrcp.f32 %v2649_v43  ;;  %vm2705_vm10 = vmor %vm2703_vm9, %vm2704_vm8  ;;  %v2681_v58 = vand.u32 2147483648, %v2649_v43  ;;  %v2679_v60 = vand.u32 2147483647, %v2649_v43 }
 0xafd   : > { %v2700_v45 = vsub.f32 1.0, %v2699_v42  ;;  %v2714_v46 = vmul.f32 %v5118_v3, %v2697_v44  ;;  %vm2675_vm13 = vweird.f32 %v2649_v43 }
 0xafe   : > { %v2682_v62 = vor.u32 1.1754944e-38, %v2681_v58  ;;  %vm2680_vm15 = vcmp.eq.f32.partialorder %v2679_v60, 8.507059e+37 }
 0xaff   : > { %v2701_v48 = vmul.f32 %v4017_v39, %v2700_v45  ;;  %3744 = vmatpush.xpose.msk.msra.mxu0 %vm1524_vm1, %v2714_v46  ;;  %3262 = vst.msk [vmem:[%s5132_s23 + $0x10] sm:$0xff] %vm1524_vm1, %v2714_v46 }
 0xb01   : > { %v2702_v50 = vadd.f32 %v4017_v39, %v2701_v48 }
 0xb02   : > { %v4019_v51 = vpop.eup %4018 }
 0xb03   : > { %v2706_v53 = vsel %vm2705_vm10, %v4017_v39, %v2702_v50  ;;  %v2671_v54 = vmul.f32 %v4019_v51, %v2649_v43  ;;  %vm2676_vm12 = vweird.f32 %v4019_v51 }
 0xb04   : > { %v2711_v55 = vsel %vm2708_vm11, %v2710_v52, %v2706_v53  ;;  %vm2677_vm14 = vmor %vm2675_vm13, %vm2676_vm12 }
 0xb05   : > { %v2672_v56 = vsub.f32 1.0, %v2671_v54  ;;  %v2715_v57 = vmul.f32 %v5122_v8, %v2711_v55 }
 0xb07   : > { %v2673_v59 = vmul.f32 %v4019_v51, %v2672_v56  ;;  %3746 = vmatpush.xpose.msk.msra.mxu1 %vm1524_vm1, %v2715_v57  ;;  %3263 = vst.msk [vmem:[%s5132_s23 + $0x18] sm:$0xff] %vm1524_vm1, %v2715_v57 }
 0xb09   : > { %v2674_v61 = vadd.f32 %v4019_v51, %v2673_v59 }
 0xb0b   : > { %v2678_v63 = vsel %vm2677_vm14, %v4019_v51, %v2674_v61 }
 0xb0c   : > { %v2683_v0 = vsel %vm2680_vm15, %v2682_v62, %v2678_v63 }
 0xb0d   : > { %v2713_v1 = vmul.f32 %v5126_v11, %v2683_v0 }
 0xb0f   : > { %3742 = vmatpush.xpose.msk.msrb.mxu3 %vm1524_vm1, %v2713_v1  ;;  %3261 = vst.msk [vmem:[%s5132_s23 + $0x8] sm:$0xff] %vm1524_vm1, %v2713_v1 }
 0xb1d   : > { %v2764_v3 = vpop.trf.xlu2 }
 0xb1e   : > { %3743 = vmatmul.msk.f32.vlgmr.msrb.gmra.mxu3 %vm1524_vm1, %v2764_v3 }
 0xb30   : > { %v2796_v2 = vpop.trf.xlu0 }
 0xb31   : > { %3745 = vmatmul.msk.f32.vlgmr.msra.gmra.mxu0 %vm1524_vm1, %v2796_v2 }
 0xb58   : > { %v2867_v5 = vpop.f32.mrf.mxu2 }
 0xb59   : > { %2948 = vxpose.xlu0.b32.start.end [1/1] (short) (narrow) %v2867_v5, 8 }
 0xb66   : > { %v2828_v6 = vpop.trf.xlu1 }
 0xb67   : > { %3747 = vmatmul.msk.f32.vlgmr.msra.gmra.mxu1 %vm1524_vm1, %v2828_v6 }
 0xba1   : > { %v2893_v8 = vpop.f32.mrf.mxu3 }
 0xbae   : > { %v2919_v7 = vpop.f32.mrf.mxu0 }
 0xbaf   : > { %3012 = vxpose.xlu2.b32.start.end [1/1] (short) (narrow) %v2919_v7, 8 }
 0xbb7   : > { %2980 = vxpose.xlu2.b32.start.end [1/1] (short) (narrow) %v2893_v8, 8 }
 0xbe4   : > { %v2945_v9 = vpop.f32.mrf.mxu1 }
 0xbe5   : > { %3044 = vxpose.xlu1.b32.start.end [1/1] (short) (narrow) %v2945_v9, 8 }
 0xbfd   : > { %v2964_v11 = vpop.trf.xlu0 }
 0xbfe   : > { %v3078_v12 = vrot.slane %v2964_v11, 4 }
 0xc48   : > { %v3028_v10 = vpop.trf.xlu2 }
 0xc49   : > { %v3076_v15 = vrot.slane %v3028_v10, 4  ;;  %v3079_v17 = vsel %vm2078_vm4, %v3028_v10, %v3078_v12 }
 0xc4a   : > { %v3087_v20 = vperm.slane %v3079_v17, %v5025_v13  ;;  %v2289_v17 = vld [vmem:[#allocation16 + $0x18] sm:$0xff] }
 0xc4b   : > { %v3077_v18 = vsel %vm2078_vm4, %v3076_v15, %v2964_v11  ;;  %3219 = vmatpush.msrb.mxu2 %v2289_v17 }
 0xc4c   : > { %v3083_v21 = vperm.slane %v3077_v18, %v5025_v13  ;;  %v3114_v26 = vrot.slane %v3087_v20, 4  ;;  %v2288_v18 = vld [vmem:[#allocation16 + $0x10] sm:$0xff] }
 0xc4d   : > { %3220 = vmatpush.msrb.mxu2 %v2288_v18 }
 0xc4e   : > { %v3102_v29 = vrot.slane %v3083_v21, 4 }
 0xc50   : > { %v2996_v16 = vpop.trf.xlu2 }
 0xc51   : > { %v3090_v19 = vrot.slane %v2996_v16, 4 }
 0xc89   : > { %v3060_v22 = vpop.trf.xlu1 }
 0xc8a   : > { %v3088_v24 = vrot.slane %v3060_v22, 4  ;;  %v3091_v25 = vsel %vm2078_vm4, %v3060_v22, %v3090_v19  ;;  %v2286_v19 = vld [vmem:[#allocation16] sm:$0xff] }
 0xc8b   : > { %v3099_v27 = vperm.slane %v3091_v25, %v5025_v13 }
 0xc8c   : > { %v3089_v28 = vsel %vm2078_vm4, %v3088_v24, %v2996_v16 }
 0xc8d   : > { %v3095_v30 = vperm.slane %v3089_v28, %v5025_v13  ;;  %v3112_v31 = vrot.slane %v3099_v27, 4  ;;  %v3115_v32 = vsel %vm2078_vm4, %v3099_v27, %v3114_v26  ;;  %v3977_v27 = vld [vmem:[%s5361_s26] ss:$0 sm:$0xff]  ;;  %s4340_s26 = scalar_lea.hbm %s4339_s8, 32 }
 0xc8e   : > { %v3123_v33 = vperm.slane %v3115_v32, %v5031_v23  ;;  %p4341_p11 = scmp.ne.s32.totalorder %s4339_s8, %s4340_s26 }
 0xc8f   : > { %v3100_v34 = vrot.slane %v3095_v30, 4  ;;  %v3103_v35 = vsel %vm2078_vm4, %v3095_v30, %v3102_v29  ;;  %v3113_v36 = vsel %vm2078_vm4, %v3112_v31, %v3087_v20 }
 0xc90   : > { %v3111_v37 = vperm.slane %v3103_v35, %v5031_v23  ;;  %v3119_v38 = vperm.slane %v3113_v36, %v5031_v23  ;;  %v3130_v39 = vrot.slane %v3123_v33, 4  ;;  %p4342_p8 = pnand %p4341_p11, %p4800_p6 }
 0xc91   : > { %v3101_v40 = vsel %vm2078_vm4, %v3100_v34, %v3083_v21 }
 0xc92   : > { %v3107_v41 = vperm.slane %v3101_v40, %v5031_v23  ;;  %v3126_v42 = vrot.slane %v3111_v37, 4  ;;  %v3128_v43 = vrot.slane %v3119_v38, 4  ;;  %v3131_v44 = vsel %vm2078_vm4, 0.0, %v3130_v39  ;;  %v3267_v37 = vld [vmem:[#allocation17 + $0x18] sm:$0xff]  ;;  %p4343_p1 = pneg %p4342_p8 }
 0xc93   : > { %v3143_v45 = vsel %vm2078_vm4, %v3130_v39, %v3119_v38  ;;  %v3148_v46 = vrot.slane %v3131_v44, 4  ;;  %3287 = vmatpush.msra.mxu3 %v3267_v37  ;;  %v3266_v38 = vld [vmem:[#allocation17 + $0x10] sm:$0xff]  ;;  %v3264_v39 = vld [vmem:[#allocation17] sm:$0xff]  ;;  %v3303_v40 = vld [vmem:[%s5362_s20 + $0x38] sm:$0xff] }
 0xc94   : > { %v3124_v47 = vrot.slane %v3107_v41, 4  ;;  %v3127_v48 = vsel %vm2078_vm4, 0.0, %v3126_v42  ;;  %v3129_v49 = vsel %vm2078_vm4, 0.0, %v3128_v43  ;;  %v3147_v50 = vperm.slane %v3143_v45, %v5025_v13  ;;  %3320 = vmatpush.msrb.mxu0 %v3303_v40  ;;  %v3300_v45 = vld [vmem:[%s5362_s20 + $0x20] sm:$0xff] }
 0xc95   : > { %v3137_v51 = vrot.slane %v3127_v48, 4  ;;  %v3132_v52 = vsel %vm2078_vm4, %v3126_v42, %v3107_v41  ;;  %v3149_v53 = vsel %vm2078_vm4, %v3148_v46, %v3129_v49  ;;  %3288 = vmatpush.msra.mxu3 %v3266_v38  ;;  %v3302_v41 = vld [vmem:[%s5362_s20 + $0x30] sm:$0xff]  ;;  %v3301_v42 = vld [vmem:[%s5362_s20 + $0x28] sm:$0xff] }
 0xc96   : > { %v3125_v54 = vsel %vm2078_vm4, 0.0, %v3124_v47  ;;  %v3136_v55 = vperm.slane %v3132_v52, %v5025_v13  ;;  %v3153_v56 = vperm.slane %v3149_v53, %v5025_v13  ;;  %v3168_v57 = vrot.slane %v3147_v50, 4  ;;  %3321 = vmatpush.msrb.mxu0 %v3302_v41  ;;  %v3299_v47 = vld [vmem:[%s5362_s20 + $0x18] sm:$0xff] }
 0xc97   : > { %v3138_v58 = vsel %vm2078_vm4, %v3137_v51, %v3125_v54 }
 0xc98   : > { %v3142_v59 = vperm.slane %v3138_v58, %v5025_v13  ;;  %v3156_v60 = vrot.slane %v3136_v55, 4  ;;  %v3169_v61 = vsel %vm2078_vm4, %v3153_v56, %v3168_v57  ;;  %v3166_v62 = vrot.slane %v3153_v56, 4  ;;  %3322 = vmatpush.msrb.mxu0 %v3301_v42 }
 0xc99   : > { %v3177_v63 = vperm.slane %v3169_v61, %v5031_v23  ;;  %v3297_v61 = vld [vmem:[%s5362_s20 + $0x8] sm:$0xff] }
 0xc9a   : > { %v3157_v0 = vsel %vm2078_vm4, %v3142_v59, %v3156_v60  ;;  %v3154_v1 = vrot.slane %v3142_v59, 4  ;;  %v3167_v2 = vsel %vm2078_vm4, %v3166_v62, %v3147_v50  ;;  %3323 = vmatpush.msrb.mxu0 %v3300_v45  ;;  %v3298_v60 = vld [vmem:[%s5362_s20 + $0x10] sm:$0xff]  ;;  %v3296_v62 = vld [vmem:[%s5362_s20] sm:$0xff] }
 0xc9b   : > { %v3165_v3 = vperm.slane %v3157_v0, %v5031_v23  ;;  %v3182_v5 = vrot.slane %v3177_v63, 4  ;;  %v3173_v6 = vperm.slane %v3167_v2, %v5031_v23 }
 0xc9c   : > { %v3155_v7 = vsel %vm2078_vm4, %v3154_v1, %v3136_v55  ;;  %3324 = vmatpush.msrb.mxu0 %v3299_v47 }
 0xc9d   : > { %v3183_v13 = vsel %vm2078_vm4, %v3182_v5, %v3165_v3  ;;  %v3184_v8 = vrot.slane %v3165_v3, 4  ;;  %v3161_v9 = vperm.slane %v3155_v7, %v5031_v23  ;;  %v3178_v10 = vrot.slane %v3173_v6, 4  ;;  %v2287_v23 = vld [vmem:[#allocation16 + $0x8] sm:$0xff]  ;;  %v3981_v3 = vld [vmem:[%s5366_s16] ss:$0 sm:$0xff] }
 0xc9e   : > { %3191 = vrot.lane.b32.xlu1 %v3183_v13, %s4509_s24  ;;  %3221 = vmatpush.msrb.mxu2 %v2287_v23  ;;  %s5363_s24 = sld [smem:[#allocation47_spill]] }
 0xc9f   : > { %v3185_v11 = vsel %vm2078_vm4, %v3177_v63, %v3184_v8  ;;  %v3180_v12 = vrot.slane %v3161_v9, 4  ;;  %v3179_v15 = vsel %vm2078_vm4, %v3178_v10, %v3161_v9  ;;  %3325 = vmatpush.msrb.mxu0 %v3298_v60  ;;  %v3980_v63 = vld [vmem:[%s5365_s15] ss:$0 sm:$0xff] }
 0xca0   : > { %3195 = vrot.lane.b32.xlu2 %v3185_v11, %s4510_s14  ;;  %3222 = vmatpush.msrb.mxu2 %v2286_v19  ;;  %s5364_s14 = sld [smem:[#allocation48_spill]] }
 0xca1   : > { %v3181_v16 = vsel %vm2078_vm4, %v3173_v6, %v3180_v12  ;;  %3326 = vmatpush.msrb.mxu0 %v3297_v61 }
 0xca2   : > { %3187 = vrot.lane.b32.xlu0 %v3181_v16, %s4511_s0 }
 0xca3   : > { %3327 = vmatpush.msrb.mxu0 %v3296_v62 }
 0xca4   : > { %v3978_v54 = vld [vmem:[%s5363_s24] ss:$0 sm:$0xff]  ;;  %s4344_s24 = scalar_lea.hbm %s5367_s29, 64 }
 0xca5   : > { %p4346_p3 = scmp.lt.s32.totalorder %s4344_s24, %s4340_s26 }
 0xca6   : > { %v3979_v57 = vld [vmem:[%s5364_s14] ss:$0 sm:$0xff] }
 0xca7   : > { %p4347_p12 = por %p4346_p3, %p4345_p13 }
 0xca9   : > { %p4348_p2 = pnand %p4347_p12, %p4343_p1 }
 0xcfa   : > { %v3196_v24 = vpop.permute.xlu2 %3195 }
 0xd10   : > { %v3192_v21 = vpop.permute.xlu1 %3191 }
 0xd14   : > { %v3188_v20 = vpop.permute.xlu0 %3187 }
 0xd15   : > { %v3198_v22 = vsel %vm1524_vm1, %v3179_v15, %v3188_v20 }
 0xd16   : > { %v3199_v25 = vsel %vm2201_vm5, %v3198_v22, %v3192_v21 }
 0xd17   : > { %v3200_v26 = vsel %vm2203_vm6, %v3199_v25, %v3196_v24  ;;  %vm3308_vm6 = vcmask 523264  }
 0xd18   : > { %3748 = vmatmul.msk.f32.vlgmr.msrb.gmra.mxu2 %vm1296_vm0, %v3200_v26 }
 0xd9b   : > { %v3224_v28 = vpop.f32.mrf.mxu2 }
 0xd9c   : > { %v3225_v29 = vadd.f32 %v3977_v27, %v3224_v28 }
 0xd9e   : > { %v3227_v30 = vadd.f32 %v3225_v29, %v5094_v14  ;;  %v3265_v14 = vld [vmem:[#allocation17 + $0x8] sm:$0xff] }
 0xd9f   : > { %3289 = vmatpush.msra.mxu3 %v3265_v14 }
 0xda0   : > { %v3230_v31 = vsel %vm1296_vm0, %v3227_v30, 0.0 }
 0xda1   : > { %3231 = vadd.xlane.f32.xlu1 %v3230_v31  ;;  %3290 = vmatpush.msra.mxu3 %v3264_v39 }
 0xe14   : > { %v3232_v32 = vpop.xlane.xlu1 %3231 }
 0xe15   : > { %v3233_v33 = vmul.f32 %v3232_v32, %v5086_v4 }
 0xe17   : > { %v3234_v34 = vsub.f32 %v3227_v30, %v3233_v33 }
 0xe19   : > { %v3235_v35 = vmul.f32 %v3234_v34, %v3234_v34 }
 0xe1b   : > { %v3236_v36 = vsel %vm1296_vm0, %v3235_v35, 0.0 }
 0xe1c   : > { %3237 = vadd.xlane.f32.xlu0 %v3236_v36 }
 0xe8f   : > { %v3238_v43 = vpop.xlane.xlu0 %3237 }
 0xe90   : > { %v3239_v44 = vmul.f32 %v3238_v43, %v5086_v4 }
 0xe92   : > { %v3240_v46 = vadd.f32 1e-05, %v3239_v44 }
 0xe94   : > { %4020 = vrsqrt.f32 %v3240_v46  ;;  %vm3247_vm4 = vweird.f32 %v3240_v46 }
 0xe9a   : > { %v4021_v48 = vpop.eup %4020 }
 0xe9b   : > { %v3242_v49 = vmul.f32 %v4021_v48, %v3240_v46  ;;  %vm3248_vm1 = vweird.f32 %v4021_v48 }
 0xe9c   : > { %vm3249_vm5 = vmor %vm3247_vm4, %vm3248_vm1 }
 0xe9d   : > { %v3243_v50 = vmul.f32 %v4021_v48, %v3242_v49 }
 0xe9f   : > { %v3244_v51 = vmul.f32 0.5, %v3243_v50 }
 0xea1   : > { %v3245_v52 = vsub.f32 1.5, %v3244_v51 }
 0xea3   : > { %v3246_v53 = vmul.f32 %v4021_v48, %v3245_v52 }
 0xea5   : > { %v3250_v55 = vsel %vm3249_vm5, %v4021_v48, %v3246_v53 }
 0xea6   : > { %v3251_v56 = vmul.f32 %v3250_v55, %v3234_v34 }
 0xea8   : > { %v3255_v58 = vmul.f32 %v3978_v54, %v3251_v56 }
 0xeaa   : > { %v3259_v59 = vadd.f32 %v3979_v57, %v3255_v58 }
 0xeac   : > { %3749 = vmatmul.msk.f32.vlgmr.msra.gmra.mxu3 %vm1296_vm0, %v3259_v59 }
 0xf2f   : > { %v3292_v0 = vpop.f32.mrf.mxu3 }
 0xf30   : > { %v3293_v1 = vadd.f32 %v3980_v63, %v3292_v0 }
 0xf32   : > { %v3295_v2 = vmax.f32 %v3293_v1, 0.0 }
 0xf34   : > { %3750 = vmatmul.msk.f32.vlgmr.msrb.gmra.mxu0 %vm3308_vm6, %v3295_v2 }
 0xfb1   : > { %v3329_v5 = vpop.f32.mrf.mxu0 }
 0xfb2   : > { %v3330_v6 = vadd.f32 %v3981_v3, %v3329_v5 }
 0xfb4   : > { %v3332_v7 = vadd.f32 %v3330_v6, %v3259_v59 }
 0xfb6   : > { %v3335_v13 = vsel %vm1296_vm0, %v3332_v7, 0.0 }
 0xfb7   : > { %3336 = vadd.xlane.f32.xlu2 %v3335_v13 }
0x102a   : > { %v3337_v8 = vpop.xlane.xlu2 %3336 }
0x102b   : > { %v3338_v9 = vmul.f32 %v3337_v8, %v5086_v4 }
0x102d   : > { %v3339_v10 = vsub.f32 %v3332_v7, %v3338_v9 }
0x102f   : > { %v3340_v11 = vmul.f32 %v3339_v10, %v3339_v10 }
0x1031   : > { %v3341_v12 = vsel %vm1296_vm0, %v3340_v11, 0.0 }
0x1032   : > { %3342 = vadd.xlane.f32.xlu1 %v3341_v12 }
0x1033   : > { %4351 = shalt.err (!%p4348_p2)
}
0x1034   : > { %s4513_s14 = smov 128   ;;  %s5369_s23 = sld [smem:[#allocation52_spill]] }
0x1035   : > { %3792 = dma.vmem_to_hbm [thread:$0]  (%p4800_p6), %s3401_s21, 512, %s3403_s11, %s3372_s7, %s4513_s14, %s4513_s14, %s4511_s0  }
0x1036   : > { %s5370_s15 = sld [smem:[#allocation54_spill]]  ;;  %s3753_s28 = sshll.u32 %s5359_s22, 3 }
0x1037   : > { %s5371_s16 = sld [smem:[#allocation53_spill]]  ;;  %s1253_s9 = scalar_lea.vmem [#allocation19], %s4923_s27 }
0x1038   : > { %s3385_s21 = sshll.u32 %s1253_s9, 4  ;;  %s3367_s22 = scalar_lea.sflag [#allocation4], %s4920_s12  ;;  %s3386_s21 = int_to_ptr.vmem [resolvable:$true] %s3385_s21 }
0x103a   : > { %v3982_v24 = vld [vmem:[%s5369_s23] ss:$0 sm:$0xff] }
0x103c   : > { %s3383_s0 = scalar_lea.hbm %s5370_s15, %s3753_s28  ;;  %s4372_s26 = scalar_lea.hbm %s5370_s15, 16 }
0x103d   : > { %v3983_v26 = vld [vmem:[%s5371_s16] ss:$0 sm:$0xff]  ;;  %s3387_s11 = sshll.u32 %s3383_s0, 4  ;;  %s3388_s11 = int_to_ptr.hbm [resolvable:$true] %s3387_s11 }
0x103e   : > { %s4366_s7 = sshra.s32 %s3388_s11, 4  ;;  %s4367_s7 = int_to_ptr.hbm [resolvable:$true] %s4366_s7 }
0x103f   : > { %s4368_s8 = scalar_lea.hbm %s4367_s7, 8  ;;  %p4373_p4 = scmp.lt.s32.totalorder %s4367_s7, %s5370_s15 }
0x1040   : > { %p4369_p0 = scmp.ne.s32.totalorder %s4367_s7, %s4368_s8  ;;  %p4374_p9 = scmp.lt.s32.totalorder %s4372_s26, %s4368_s8 }
0x1042   : > { %p4370_p7 = pnand %p4369_p0, %p4800_p6  ;;  %p4375_p10 = por %p4374_p9, %p4373_p4 }
0x1044   : > { %p4371_p5 = pneg %p4370_p7 }
0x1046   : > { %p4376_p11 = pnand %p4375_p10, %p4371_p5 }
0x10a5   : > { %v3343_v15 = vpop.xlane.xlu1 %3342 }
0x10a6   : > { %v3344_v16 = vmul.f32 %v3343_v15, %v5086_v4 }
0x10a8   : > { %v3345_v17 = vadd.f32 1e-05, %v3344_v16 }
0x10aa   : > { %4022 = vrsqrt.f32 %v3345_v17  ;;  %vm3352_vm3 = vweird.f32 %v3345_v17 }
0x10b0   : > { %v4023_v18 = vpop.eup %4022 }
0x10b1   : > { %v3347_v23 = vmul.f32 %v4023_v18, %v3345_v17  ;;  %vm3353_vm2 = vweird.f32 %v4023_v18 }
0x10b2   : > { %vm3354_vm7 = vmor %vm3352_vm3, %vm3353_vm2 }
0x10b3   : > { %v3348_v19 = vmul.f32 %v4023_v18, %v3347_v23 }
0x10b5   : > { %v3349_v20 = vmul.f32 0.5, %v3348_v19 }
0x10b7   : > { %v3350_v21 = vsub.f32 1.5, %v3349_v20 }
0x10b9   : > { %v3351_v22 = vmul.f32 %v4023_v18, %v3350_v21 }
0x10bb   : > { %v3355_v25 = vsel %vm3354_vm7, %v4023_v18, %v3351_v22 }
0x10bc   : > { %v3356_v4 = vmul.f32 %v3355_v25, %v3339_v10 }
0x10be   : > { %v3360_v27 = vmul.f32 %v3982_v24, %v3356_v4 }
0x10c0   : > { %v3364_v28 = vadd.f32 %v3983_v26, %v3360_v27 }
0x10c2   : > { %3365 = vst.msk [vmem:[%s1253_s9] sm:$0xff] %vm1296_vm0, %v3364_v28 }
0x10c3   : > { %4379 = shalt.err (!%p4376_p11)
}
0x10c4   : > { %3791 = dma.vmem_to_hbm [thread:$0]  (%p4800_p6), %s3386_s21, 128, %s3388_s11, %s3367_s22  }
0x10c5 PF: > { %s5372_s27 = sld [smem:[#allocation56_spill]]  ;;  %p5375_p1 = scmp.ge.s32.totalorder %s4462_s10, 2 }
0x10c6   : > { %s5373_s24 = sld [smem:[#allocation62_spill]] }
0x10cb   : > { %s3417_s12 = sand.u32 1, %s5372_s27  }
0x10cc   : > { %p5374_p8 = scmp.ne.s32.totalorder %s5373_s24, 0  ;;  %s3418_s14 = scalar_lea.sflag [#allocation4], %s3417_s12 }
0x10ce   : > { %p3828_p13 = pnand %p5375_p1, %p5374_p8 }
0x10d0   : > { %p3829_p3 = pneg %p3828_p13 }
0x10d2   : > { %4433 = dma.done.wait (%p3829_p3), %s3418_s14, 128  }
0x10d3   : > { %4435 = vsyncadd (%p3829_p3), %s3418_s14, 4294967168  ;;  %s3428_s23 = scalar_lea.sflag [#allocation21], %s3417_s12 }
0x10d4   : > { %4437 = dma.done.wait (%p3829_p3), %s3428_s23, 512  }
0x10d5   : > { %4439 = vsyncadd (%p3829_p3), %s3428_s23, 4294966784  ;;  %s94_s10 = sadd.s32 1, %s4462_s10   ;;  %s5376_s18 = sld [smem:[#allocation61_spill]] }
0x10d6   : > { %p91_p12 = scmp.ge.s32.totalorder %s94_s10, 4   ;;  %s5377_s0 = sld [smem:[#allocation58_spill]] }
0x10d7   : > { %s5378_s7 = sld [smem:[#allocation59_spill]]  ;;  %s5379_s28 = smov %s4446_s1 }
0x10d8   : > { %s5380_s1 = smov %s4450_s2  ;;  %93 = sbr.rel (!%p91_p12) target bundleno = 77 (0x4d), region = 302 }
0x10db   : > { %s5381_s2 = smov %s5376_s18 }
0x10dd   :  { %3434 = vsyncpa [#allocation3], 1 }
0x10de   :  { %3436 = vsyncpa [#allocation3 + $0x1], 1 }
0x10df   :  { %3437 = vsyncpa [#allocation6], 1 }
0x10e0   :  { %3439 = vsyncpa [#allocation6 + $0x1], 1 }
0x10e1   :  { %3440 = vsyncpa [#allocation9], 1 }
0x10e2   :  { %3442 = vsyncpa [#allocation9 + $0x1], 1 }
0x10e3   :  { %3443 = vsyncpa [#allocation12], 1 }
0x10e4   :  { %3444 = vsyncpa [#allocation15], 1 }
0x10e5   :  { %3445 = vsyncpa [#allocation18], 1 }
0x10e6   :  { %3446 = vsyncpa [#allocation4], 1 }
0x10e7   :  { %3448 = vsyncpa [#allocation4 + $0x1], 1 }
0x10e8   :  { %3449 = vsyncpa [#allocation21], 1 }
0x10e9   :  { %3451 = vsyncpa [#allocation21 + $0x1], 1 }

</bundles_post_ra>
